<compile_context>
chip_gen: v7x
topology: tpu7x:2x2x1
jax: 0.10.0
libtpu: 0.0.40
codegen_flags: <defaults>
</compile_context>

<pallas_src>
import functools
import math

import jax
import jax.numpy as jnp
from jax import lax
from jax.experimental import pallas as pl
from jax.experimental.pallas import tpu as pltpu

BN_EPS = 1e-5                   # PyTorch BatchNorm1d default eps
LEAKY_SLOPE = 0.01              # F.leaky_relu default negative_slope
MXU_DTYPE = jnp.bfloat16        # matmul operand dtype (f32 accumulation)
ACT_DTYPE = jnp.float32         # temporal inter-pass activations (see header)
SPA_DTYPE = jnp.bfloat16        # spatial-stage raw input stream
VMEM_LIMIT = 48 * 1024 * 1024   # scoped VMEM; < physical on v5e/v6e (128M) and v7x (64M)
# On v7x set this to pltpu.CORE_PARALLEL so both TensorCores shard the batch
# grid; "parallel" is the portable default for single-TC v5e/v6e.
BATCH_DIM_SEMANTICS = "parallel"


def _cdiv(a, b):
    return -(-a // b)


def _round_up(n, m):
    return _cdiv(n, m) * m


def _leaky_relu(x):
    return jnp.where(x >= 0, x, LEAKY_SLOPE * x)


# ---------------------------------------------------------------------------
# Temporal stage: Feature_extractor_1DCNN_RUL with kernel_size=3, channel-major
#   pass 1: conv1 (Cin -> H) + per-tile partial BN1 stats
#   pass 2: BN1 + ReLU + conv2 (H -> H) + per-tile partial BN2 stats
#   (BN2 + ReLU are fused into the spatial kernel)
# Activations are [channels (sublanes), B*L (lanes)]; blocks are lane-dense.
# ---------------------------------------------------------------------------
def _conv3_cm(x, w_ref, L):
    """k=3 / pad=1 Conv1d in channel-major layout as three tap GEMMs.

    x: [C, M] f32 with lane m = b*L + l.  Time shifts are lane rolls masked by
    (lane % L) edge tests, so taps never cross the per-sample row boundary.
    """
    _, M = x.shape
    t = lax.broadcasted_iota(jnp.int32, (1, M), 1) % L
    xm1 = jnp.where(t >= 1, pltpu.roll(x, shift=1, axis=1), 0.0)          # x[t-1]
    xp1 = jnp.where(t < L - 1, pltpu.roll(x, shift=M - 1, axis=1), 0.0)   # x[t+1]
    cdt = w_ref.dtype
    y = jnp.dot(w_ref[1], x.astype(cdt), preferred_element_type=jnp.float32)
    y = y + jnp.dot(w_ref[0], xm1.astype(cdt), preferred_element_type=jnp.float32)
    y = y + jnp.dot(w_ref[2], xp1.astype(cdt), preferred_element_type=jnp.float32)
    return y                                                              # [H, M] f32


def _emit_stats(y, s_ref, ss_ref, valid_cols):
    """Per-channel partial sums for BatchNorm; padded tail columns are masked."""
    H, M = y.shape
    col = pl.program_id(0) * M + lax.broadcasted_iota(jnp.int32, (1, M), 1)
    ym = jnp.where(col < valid_cols, y, 0.0)
    s_ref[...] = jnp.sum(ym, axis=1, keepdims=True).reshape(1, H, 1)
    ss_ref[...] = jnp.sum(ym * ym, axis=1, keepdims=True).reshape(1, H, 1)


def _conv_stats_kernel(x_ref, w_ref, y_ref, s_ref, ss_ref, *, L, valid_cols):
    y = _conv3_cm(x_ref[...].astype(jnp.float32), w_ref, L)
    y_ref[...] = y.astype(y_ref.dtype)
    _emit_stats(y, s_ref, ss_ref, valid_cols)


def _bn_conv_stats_kernel(y1_ref, sc_ref, sh_ref, w_ref, y_ref, s_ref, ss_ref,
                          *, L, valid_cols):
    # BN1(affine) + ReLU: per-channel scale/shift are [H, 1] sublane broadcasts.
    a = jnp.maximum(y1_ref[...].astype(jnp.float32) * sc_ref[...] + sh_ref[...], 0.0)
    y = _conv3_cm(a, w_ref, L)
    y_ref[...] = y.astype(y_ref.dtype)
    _emit_stats(y, s_ref, ss_ref, valid_cols)


def _bn_affine(s, ss, count, gamma, beta):
    """Train-mode BatchNorm1d: biased variance over (batch, time) + affine."""
    mean = s / count
    var = jnp.maximum(ss / count - mean * mean, 0.0)
    scale = gamma * lax.rsqrt(var + BN_EPS)
    shift = beta - mean * scale
    return scale, shift


def temporal_forward(tem_in, w1, g1, b1, w2, g2, b2, *, tile_cap=512):
    """tem_in: [B, L, Cin] f32 (B = bs*num_nodes).

    Returns (raw conv2 output [H, B*L] channel-major, BN2 scale [H,1], shift [H,1]);
    BN2 + ReLU are applied by the consumer (fused into the spatial kernel).
    """
    B, L, Cin = tem_in.shape
    H = w1.shape[1]

    # Channel-major lane-fused layout: column m = b*L + l, channel on sublanes.
    x_cm = jnp.transpose(tem_in.reshape(B * L, Cin))                 # [Cin, B*L]

    # Tile sizing: TB fused-batch rows -> TB*L lanes per block, multiple of 128
    # (unmasked lane-dense stores).  cdiv grid + zero padding, no divisor hunt.
    align = max(1, 128 // math.gcd(L, 128))
    cap = max(align, (tile_cap // align) * align)
    nt = _cdiv(B, cap)
    TB = _round_up(_cdiv(B, nt), align)
    B_pad = _round_up(B, TB)
    nt = B_pad // TB
    TBL = TB * L
    if B_pad != B:
        x_cm = jnp.pad(x_cm, ((0, 0), (0, (B_pad - B) * L)))

    cp = pltpu.CompilerParams(dimension_semantics=(BATCH_DIM_SEMANTICS,),
                              vmem_limit_bytes=VMEM_LIMIT)
    act_spec = lambda ch: pl.BlockSpec((ch, TBL), lambda i: (0, i))
    full_spec = lambda shp: pl.BlockSpec(shp, lambda i: (0,) * len(shp))
    stat_spec = pl.BlockSpec((1, H, 1), lambda i: (i, 0, 0))
    stat_shape = jax.ShapeDtypeStruct((nt, H, 1), jnp.float32)
    act_shape = jax.ShapeDtypeStruct((H, B_pad * L), ACT_DTYPE)

    w1m = w1.astype(MXU_DTYPE)   # [3, H, Cin] tap-major (out x in)
    w2m = w2.astype(MXU_DTYPE)   # [3, H, H]

    # ---- pass 1: conv1 + per-tile partial BN1 statistics --------------------
    y1_raw, s1, ss1 = pl.pallas_call(
        functools.partial(_conv_stats_kernel, L=L, valid_cols=B * L),
        out_shape=(act_shape, stat_shape, stat_shape),
        grid_spec=pltpu.PrefetchScalarGridSpec(
            num_scalar_prefetch=0, grid=(nt,),
            in_specs=[act_spec(Cin), full_spec((3, H, Cin))],
            out_specs=(act_spec(H), stat_spec, stat_spec)),
        compiler_params=cp,
    )(x_cm, w1m)

    scale1, shift1 = _bn_affine(jnp.sum(s1, axis=0), jnp.sum(ss1, axis=0),
                                B * L, g1, b1)

    # ---- pass 2: BN1 + ReLU + conv2 + per-tile partial BN2 statistics -------
    y2_raw, s2, ss2 = pl.pallas_call(
        functools.partial(_bn_conv_stats_kernel, L=L, valid_cols=B * L),
        out_shape=(act_shape, stat_shape, stat_shape),
        grid_spec=pltpu.PrefetchScalarGridSpec(
            num_scalar_prefetch=0, grid=(nt,),
            in_specs=[act_spec(H), full_spec((H, 1)), full_spec((H, 1)),
                      full_spec((3, H, H))],
            out_specs=(act_spec(H), stat_spec, stat_spec)),
        compiler_params=cp,
    )(y1_raw, scale1, shift1, w2m)

    scale2, shift2 = _bn_affine(jnp.sum(s2, axis=0), jnp.sum(ss2, axis=0),
                                B * L, g2, b2)
    return y2_raw[:, :B * L], scale2, shift2


# ---------------------------------------------------------------------------
# Spatial stage: (fused BN2+ReLU) + Dot_Graph_Construction_weights +
# MPNN_mk_v2 (k=1), processing TG graphs per grid step.
# ---------------------------------------------------------------------------
def _spatial_kernel(x_ref, sc_ref, sh_ref, wm_ref, bm_ref, wt_ref, bt_ref, o_ref):
    TG, N, F = x_ref.shape
    O = wt_ref.shape[-1]
    cdt = wm_ref.dtype

    # BN2(affine) + ReLU fused here (replaces the third temporal pass); the
    # scale/shift were pre-permuted to the per-graph layout in the wrapper.
    x = jnp.maximum(x_ref[...].astype(jnp.float32) * sc_ref[...] + sh_ref[...], 0.0)

    # --- Dot_Graph_Construction_weights: one 2D GEMM for the mapping Linear ---
    x2d = x.reshape(TG * N, F).astype(cdt)
    mapped = jnp.dot(x2d, wm_ref[...],
                     preferred_element_type=jnp.float32) + bm_ref[...]
    mapped_c = mapped.reshape(TG, N, F).astype(cdt)
    adj = jnp.einsum('bnf,bmf->bnm', mapped_c, mapped_c,
                     preferred_element_type=jnp.float32)          # [TG, N, N]

    r = lax.broadcasted_iota(jnp.int32, (N, N), 0)
    c = lax.broadcasted_iota(jnp.int32, (N, N), 1)
    eye = (r == c).astype(jnp.float32)                            # broadcasts over TG

    adj = _leaky_relu(adj - eye * 1e8)                            # mask/softmax in f32
    adj = adj - jnp.max(adj, axis=-1, keepdims=True)
    e = jnp.exp(adj)
    adj = e * pl.reciprocal(jnp.sum(e, axis=-1, keepdims=True), approx=True)
    adj = adj + eye

    # --- MPNN_mk_v2, k=1: leaky_relu(theta(A @ X) + X) ------------------------
    h = jnp.einsum('bnm,bmf->bnf', adj.astype(cdt), x.astype(cdt),
                   preferred_element_type=jnp.float32)
    out2d = jnp.dot(h.reshape(TG * N, F).astype(cdt), wt_ref[...],
                    preferred_element_type=jnp.float32) + bt_ref[...]
    out = out2d.reshape(TG, N, O)
    o_ref[...] = _leaky_relu(out + x).astype(o_ref.dtype)         # residual needs O == F


def spatial_forward(x_raw, sc, sh, wm_t, bm, wt_t, bt, *, tile_cap=128):
    Bs, N, F = x_raw.shape
    O = wt_t.shape[-1]
    ng = _cdiv(Bs, max(1, tile_cap))
    TG = _cdiv(Bs, ng)
    Bs_pad = TG * ng
    if Bs_pad != Bs:
        pad = ((0, Bs_pad - Bs), (0, 0), (0, 0))
        x_raw = jnp.pad(x_raw, pad)
        sc = jnp.pad(sc, pad)
        sh = jnp.pad(sh, pad)

    out = pl.pallas_call(
        _spatial_kernel,
        out_shape=jax.ShapeDtypeStruct((Bs_pad, N, O), jnp.float32),
        grid_spec=pltpu.PrefetchScalarGridSpec(
            num_scalar_prefetch=0, grid=(ng,),
            in_specs=[pl.BlockSpec((TG, N, F), lambda i: (i, 0, 0)),
                      pl.BlockSpec((TG, 1, F), lambda i: (i, 0, 0)),
                      pl.BlockSpec((TG, 1, F), lambda i: (i, 0, 0)),
                      pl.BlockSpec((F, F), lambda i: (0, 0)),
                      pl.BlockSpec((1, F), lambda i: (0, 0)),
                      pl.BlockSpec((F, O), lambda i: (0, 0)),
                      pl.BlockSpec((1, O), lambda i: (0, 0))],
            out_specs=pl.BlockSpec((TG, N, O), lambda i: (i, 0, 0))),
        compiler_params=pltpu.CompilerParams(
            dimension_semantics=(BATCH_DIM_SEMANTICS,),
            vmem_limit_bytes=VMEM_LIMIT),
    )(x_raw, sc, sh, wm_t.astype(MXU_DTYPE), bm, wt_t.astype(MXU_DTYPE), bt)
    return out[:Bs]


# ---------------------------------------------------------------------------
# Full MPNN_block_seperate forward (glue reshapes exactly mirror PyTorch)
# ---------------------------------------------------------------------------
@functools.partial(jax.jit,
                   static_argnames=("time_conv", "temporal_tile", "spatial_tile"))
def mpnn_block_seperate_forward(x, params, *, time_conv,
                                temporal_tile=512, spatial_tile=128):
    bs, time_length, num_nodes, input_dim = x.shape
    H = 2 * input_dim
    L = time_length
    T = time_conv
    B = bs * num_nodes

    # tem_input = reshape(transpose(input, 1, 2), [bs*num_nodes, L, D])
    tem_in = jnp.transpose(x, (0, 2, 1, 3)).reshape(B, L, input_dim)

    y2_cm, scale2, shift2 = temporal_forward(
        tem_in, params['w1'], params['g1'], params['b1'],
        params['w2'], params['g2'], params['b2'], tile_cap=temporal_tile)

    # PyTorch reshapes the NCL conv output to [bs, N, time_conv, H], mixing the
    # (channel, time) block (valid only when time_conv == L).  That permutation
    # is not a rectangular block map, so this small relayout stays in XLA; with
    # the channel-major kernel output it is only a leading-axes transpose.  It
    # carries the RAW conv2 output: BN2 + ReLU are fused into the spatial kernel.
    tem_ncl = jnp.transpose(y2_cm.reshape(H, B, L), (1, 0, 2))       # [B, H, L]
    tem_r = tem_ncl.reshape(bs, num_nodes, T, H)
    spa_raw = jnp.transpose(tem_r, (0, 2, 1, 3)).reshape(
        bs * T, num_nodes, H).astype(SPA_DTYPE)

    # BN2 channel of spa_raw[g, n, h] is c = ((g % T) * H + h) // L; precompute
    # per-graph scale/shift so the spatial kernel applies BN2 + ReLU inline.
    th = jnp.arange(T * H) // L
    sc_spa = jnp.tile(scale2[:, 0][th].reshape(T, 1, H), (bs, 1, 1))
    sh_spa = jnp.tile(shift2[:, 0][th].reshape(T, 1, H), (bs, 1, 1))

    return spatial_forward(spa_raw, sc_spa, sh_spa,
                           params['wm_t'], params['bm'],
                           params['wt_t'], params['bt'],
                           tile_cap=spatial_tile)


def init_params(key, input_dim, output_dim):
    H = 2 * input_dim
    ks = jax.random.split(key, 6)
    scale = 0.1
    # Conv1d weights in PyTorch layout [out, in, k], stored tap-major [3, out, in]
    # so each k=3 conv is three (out x in) GEMMs against the lane-fused activation.
    w1_pt = jax.random.normal(ks[0], (H, input_dim, 3), jnp.float32) * scale
    w2_pt = jax.random.normal(ks[1], (H, H, 3), jnp.float32) * scale
    w1 = jnp.transpose(w1_pt, (2, 0, 1))
    w2 = jnp.transpose(w2_pt, (2, 0, 1))
    # BatchNorm1d default affine init: gamma=1, beta=0 (stored [H, 1] for
    # sublane broadcast in the channel-major kernels)
    g1 = jnp.ones((H, 1), jnp.float32); b1 = jnp.zeros((H, 1), jnp.float32)
    g2 = jnp.ones((H, 1), jnp.float32); b2 = jnp.zeros((H, 1), jnp.float32)
    # Linear weights in PyTorch [out, in] convention, transposed for the kernels
    wm = jax.random.normal(ks[2], (H, H), jnp.float32) * scale
    bm = jax.random.normal(ks[3], (H,), jnp.float32) * scale
    wt = jax.random.normal(ks[4], (output_dim, H), jnp.float32) * scale
    bt = jax.random.normal(ks[5], (output_dim,), jnp.float32) * scale
    return dict(w1=w1, w2=w2, g1=g1, b1=b1, g2=g2, b2=b2,
                wm_t=wm.T, bm=bm.reshape(1, H),
                wt_t=wt.T, bt=bt.reshape(1, output_dim))


if __name__ == "__main__":
    bs, time_length, num_nodes, input_dim = 2, 8, 16, 4
    output_dim = 2 * input_dim   # required by the residual add in MPNN_mk_v2
    time_conv = time_length      # k=3 / pad=1 / stride=1 convs preserve length

    key = jax.random.PRNGKey(0)
    kx, kp = jax.random.split(key)
    x = jax.random.normal(kx, (bs, time_length, num_nodes, input_dim), jnp.float32)
    params = init_params(kp, input_dim, output_dim)

    # small tile caps so the demo exercises multi-step grids, the cross-tile
    # two-pass BatchNorm reduction, and the padded-tail (cdiv) spatial grid
    out = mpnn_block_seperate_forward(x, params, time_conv=time_conv,
                                      temporal_tile=16, spatial_tile=6)
    out = jax.block_until_ready(out)
    assert out.shape == (bs * time_conv, num_nodes, output_dim), out.shape
    assert bool(jnp.all(jnp.isfinite(out)))
    print("KERNEL_OK")
</pallas_src>

<mosaic_0001>
module attributes {stable_mosaic.version = 11 : i64} {
  func.func @_bn_conv_stats_kernel(%arg0: i32, %arg1: memref<8x128xf32, #tpu.memory_space<vmem>>, %arg2: memref<8x1xf32, #tpu.memory_space<vmem>>, %arg3: memref<8x1xf32, #tpu.memory_space<vmem>>, %arg4: memref<3x8x8xbf16, #tpu.memory_space<vmem>>, %arg5: memref<8x128xf32, #tpu.memory_space<vmem>>, %arg6: memref<1x8x1xf32, #tpu.memory_space<vmem>>, %arg7: memref<1x8x1xf32, #tpu.memory_space<vmem>>) attributes {dimension_semantics = [#tpu.dimension_semantics<parallel>], iteration_bounds = array<i64: 2>, scalar_prefetch = 0 : i64, scratch_operands = 0 : i64, tpu.core_type = #tpu.core_type<tc>, window_params = [{transform_indices = @transform_0, window_bounds = array<i64: 8, 128>}, {pipeline_mode = #tpu.pipeline_mode<synchronous>, transform_indices = @transform_1, window_bounds = array<i64: 8, 1>}, {pipeline_mode = #tpu.pipeline_mode<synchronous>, transform_indices = @transform_2, window_bounds = array<i64: 8, 1>}, {pipeline_mode = #tpu.pipeline_mode<synchronous>, transform_indices = @transform_3, window_bounds = array<i64: 3, 8, 8>}, {transform_indices = @transform_4, window_bounds = array<i64: 8, 128>}, {transform_indices = @transform_5, window_bounds = array<i64: 1, 8, 1>}, {transform_indices = @transform_6, window_bounds = array<i64: 1, 8, 1>}]} {
    %c0 = arith.constant 0 : index
    %c0_0 = arith.constant 0 : index
    %0 = vector.load %arg1[%c0, %c0_0] : memref<8x128xf32, #tpu.memory_space<vmem>>, vector<8x128xf32>
    %c0_1 = arith.constant 0 : index
    %c0_2 = arith.constant 0 : index
    %1 = vector.load %arg2[%c0_1, %c0_2] : memref<8x1xf32, #tpu.memory_space<vmem>>, vector<8x1xf32>
    %2 = vector.broadcast %1 : vector<8x1xf32> to vector<8x128xf32>
    %3 = arith.mulf %0, %2 : vector<8x128xf32>
    %c0_3 = arith.constant 0 : index
    %c0_4 = arith.constant 0 : index
    %4 = vector.load %arg3[%c0_3, %c0_4] : memref<8x1xf32, #tpu.memory_space<vmem>>, vector<8x1xf32>
    %5 = vector.broadcast %4 : vector<8x1xf32> to vector<8x128xf32>
    %6 = arith.addf %3, %5 : vector<8x128xf32>
    %cst = arith.constant 0.000000e+00 : f32
    %7 = vector.broadcast %cst : f32 to vector<8x128xf32>
    %8 = arith.maximumf %6, %7 : vector<8x128xf32>
    %9 = tpu.iota {dimensions = array<i32: 1>} : vector<1x128xi32>
    %c8_i32 = arith.constant 8 : i32
    %c0_i32 = arith.constant 0 : i32
    %10 = arith.cmpi eq, %c8_i32, %c0_i32 : i32
    %c1_i32 = arith.constant 1 : i32
    %11 = arith.select %10, %c1_i32, %c8_i32 : i32
    %12 = vector.broadcast %11 : i32 to vector<1x128xi32>
    %13 = arith.remsi %9, %12 : vector<1x128xi32>
    %c0_i32_5 = arith.constant 0 : i32
    %14 = vector.broadcast %c0_i32_5 : i32 to vector<1x128xi32>
    %15 = arith.cmpi ne, %13, %14 : vector<1x128xi32>
    %c0_i32_6 = arith.constant 0 : i32
    %16 = vector.broadcast %c0_i32_6 : i32 to vector<1x128xi32>
    %17 = arith.cmpi slt, %13, %16 : vector<1x128xi32>
    %c0_i32_7 = arith.constant 0 : i32
    %18 = arith.cmpi slt, %11, %c0_i32_7 : i32
    %19 = vector.broadcast %18 : i1 to vector<1x128xi1>
    %20 = vector.broadcast %19 : vector<1x128xi1> to vector<1x128xi1>
    %21 = arith.xori %17, %20 : vector<1x128xi1>
    %22 = arith.andi %21, %15 : vector<1x128xi1>
    %23 = vector.broadcast %11 : i32 to vector<1x128xi32>
    %24 = arith.addi %13, %23 : vector<1x128xi32>
    %25 = arith.select %22, %24, %13 : vector<1x128xi1>, vector<1x128xi32>
    %c1_i32_8 = arith.constant 1 : i32
    %26 = vector.broadcast %c1_i32_8 : i32 to vector<1x128xi32>
    %27 = arith.cmpi sge, %25, %26 : vector<1x128xi32>
    %c1_i32_9 = arith.constant 1 : i32
    %28 = tpu.dynamic_rotate %8 by %c1_i32_9 dim 1 : vector<8x128xf32>, i32 -> vector<8x128xf32>
    %cst_10 = arith.constant 0.000000e+00 : f32
    %29 = vector.shape_cast %27 : vector<1x128xi1> to vector<1x128xi1>
    %30 = vector.broadcast %29 : vector<1x128xi1> to vector<8x128xi1>
    %31 = vector.broadcast %cst_10 : f32 to vector<8x128xf32>
    %32 = arith.select %30, %28, %31 : vector<8x128xi1>, vector<8x128xf32>
    %c7_i32 = arith.constant 7 : i32
    %33 = vector.broadcast %c7_i32 : i32 to vector<1x128xi32>
    %34 = arith.cmpi slt, %25, %33 : vector<1x128xi32>
    %c127_i32 = arith.constant 127 : i32
    %35 = tpu.dynamic_rotate %8 by %c127_i32 dim 1 : vector<8x128xf32>, i32 -> vector<8x128xf32>
    %cst_11 = arith.constant 0.000000e+00 : f32
    %36 = vector.shape_cast %34 : vector<1x128xi1> to vector<1x128xi1>
    %37 = vector.broadcast %36 : vector<1x128xi1> to vector<8x128xi1>
    %38 = vector.broadcast %cst_11 : f32 to vector<8x128xf32>
    %39 = arith.select %37, %35, %38 : vector<8x128xi1>, vector<8x128xf32>
    %c1 = arith.constant 1 : index
    %c0_12 = arith.constant 0 : index
    %c0_13 = arith.constant 0 : index
    %40 = vector.load %arg4[%c1, %c0_12, %c0_13] : memref<3x8x8xbf16, #tpu.memory_space<vmem>>, vector<1x8x8xbf16>
    %41 = vector.shape_cast %40 : vector<1x8x8xbf16> to vector<8x8xbf16>
    %42 = arith.truncf %8 : vector<8x128xf32> to vector<8x128xbf16>
    %cst_14 = arith.constant dense<0.000000e+00> : vector<8x128xf32>
    %43 = tpu.matmul %41, %42, %cst_14 {dimension_numbers = #tpu.dot_dimension_numbers<[1], [0], [0], [1], [0, 0, 1, 1], [], []>} : vector<8x8xbf16>, vector<8x128xbf16>, vector<8x128xf32> -> vector<8x128xf32>
    %c0_15 = arith.constant 0 : index
    %c0_16 = arith.constant 0 : index
    %c0_17 = arith.constant 0 : index
    %44 = vector.load %arg4[%c0_15, %c0_16, %c0_17] : memref<3x8x8xbf16, #tpu.memory_space<vmem>>, vector<1x8x8xbf16>
    %45 = vector.shape_cast %44 : vector<1x8x8xbf16> to vector<8x8xbf16>
    %46 = arith.truncf %32 : vector<8x128xf32> to vector<8x128xbf16>
    %cst_18 = arith.constant dense<0.000000e+00> : vector<8x128xf32>
    %47 = tpu.matmul %45, %46, %cst_18 {dimension_numbers = #tpu.dot_dimension_numbers<[1], [0], [0], [1], [0, 0, 1, 1], [], []>} : vector<8x8xbf16>, vector<8x128xbf16>, vector<8x128xf32> -> vector<8x128xf32>
    %48 = arith.addf %43, %47 : vector<8x128xf32>
    %c2 = arith.constant 2 : index
    %c0_19 = arith.constant 0 : index
    %c0_20 = arith.constant 0 : index
    %49 = vector.load %arg4[%c2, %c0_19, %c0_20] : memref<3x8x8xbf16, #tpu.memory_space<vmem>>, vector<1x8x8xbf16>
    %50 = vector.shape_cast %49 : vector<1x8x8xbf16> to vector<8x8xbf16>
    %51 = arith.truncf %39 : vector<8x128xf32> to vector<8x128xbf16>
    %cst_21 = arith.constant dense<0.000000e+00> : vector<8x128xf32>
    %52 = tpu.matmul %50, %51, %cst_21 {dimension_numbers = #tpu.dot_dimension_numbers<[1], [0], [0], [1], [0, 0, 1, 1], [], []>} : vector<8x8xbf16>, vector<8x128xbf16>, vector<8x128xf32> -> vector<8x128xf32>
    %53 = arith.addf %48, %52 : vector<8x128xf32>
    %c0_22 = arith.constant 0 : index
    %c0_23 = arith.constant 0 : index
    %54 = vector.load %arg5[%c0_22, %c0_23] : memref<8x128xf32, #tpu.memory_space<vmem>>, vector<8x128xf32>
    tpu.vector_store %arg5[%c0_22, %c0_23], %53 {strides = array<i32>} : memref<8x128xf32, #tpu.memory_space<vmem>>, vector<8x128xf32>,
    %c128_i32 = arith.constant 128 : i32
    %55 = arith.muli %arg0, %c128_i32 : i32
    %56 = tpu.iota {dimensions = array<i32: 1>} : vector<1x128xi32>
    %57 = vector.broadcast %55 : i32 to vector<1x128xi32>
    %58 = arith.addi %57, %56 : vector<1x128xi32>
    %c256_i32 = arith.constant 256 : i32
    %59 = vector.broadcast %c256_i32 : i32 to vector<1x128xi32>
    %60 = arith.cmpi slt, %58, %59 : vector<1x128xi32>
    %cst_24 = arith.constant 0.000000e+00 : f32
    %61 = vector.shape_cast %60 : vector<1x128xi1> to vector<1x128xi1>
    %62 = vector.broadcast %61 : vector<1x128xi1> to vector<8x128xi1>
    %63 = vector.broadcast %cst_24 : f32 to vector<8x128xf32>
    %64 = arith.select %62, %53, %63 : vector<8x128xi1>, vector<8x128xf32>
    %cst_25 = arith.constant dense<0.000000e+00> : vector<8xf32>
    %65 = vector.multi_reduction <add>, %64, %cst_25 [1] : vector<8x128xf32> to vector<8xf32>
    %66 = vector.shape_cast %65 : vector<8xf32> to vector<8x1xf32>
    %67 = vector.shape_cast %66 : vector<8x1xf32> to vector<1x8x1xf32>
    %c0_26 = arith.constant 0 : index
    %c0_27 = arith.constant 0 : index
    %c0_28 = arith.constant 0 : index
    %68 = vector.load %arg6[%c0_26, %c0_27, %c0_28] : memref<1x8x1xf32, #tpu.memory_space<vmem>>, vector<1x8x1xf32>
    tpu.vector_store %arg6[%c0_26, %c0_27, %c0_28], %67 {strides = array<i32>} : memref<1x8x1xf32, #tpu.memory_space<vmem>>, vector<1x8x1xf32>,
    %69 = arith.mulf %64, %64 : vector<8x128xf32>
    %cst_29 = arith.constant dense<0.000000e+00> : vector<8xf32>
    %70 = vector.multi_reduction <add>, %69, %cst_29 [1] : vector<8x128xf32> to vector<8xf32>
    %71 = vector.shape_cast %70 : vector<8xf32> to vector<8x1xf32>
    %72 = vector.shape_cast %71 : vector<8x1xf32> to vector<1x8x1xf32>
    %c0_30 = arith.constant 0 : index
    %c0_31 = arith.constant 0 : index
    %c0_32 = arith.constant 0 : index
    %73 = vector.load %arg7[%c0_30, %c0_31, %c0_32] : memref<1x8x1xf32, #tpu.memory_space<vmem>>, vector<1x8x1xf32>
    tpu.vector_store %arg7[%c0_30, %c0_31, %c0_32], %72 {strides = array<i32>} : memref<1x8x1xf32, #tpu.memory_space<vmem>>, vector<1x8x1xf32>,
    return
  }
  func.func @transform_0(%arg0: i32) -> (i32, i32) {
    %c0_i32 = arith.constant 0 : i32
    %c0_i32_0 = arith.constant 0 : i32
    return %c0_i32, %arg0 : i32, i32
  }
  func.func @transform_1(%arg0: i32) -> (i32, i32) {
    %c0_i32 = arith.constant 0 : i32
    %c0_i32_0 = arith.constant 0 : i32
    %c0_i32_1 = arith.constant 0 : i32
    return %c0_i32, %c0_i32_0 : i32, i32
  }
  func.func @transform_2(%arg0: i32) -> (i32, i32) {
    %c0_i32 = arith.constant 0 : i32
    %c0_i32_0 = arith.constant 0 : i32
    %c0_i32_1 = arith.constant 0 : i32
    return %c0_i32, %c0_i32_0 : i32, i32
  }
  func.func @transform_3(%arg0: i32) -> (i32, i32, i32) {
    %c0_i32 = arith.constant 0 : i32
    %c0_i32_0 = arith.constant 0 : i32
    %c0_i32_1 = arith.constant 0 : i32
    %c0_i32_2 = arith.constant 0 : i32
    return %c0_i32, %c0_i32_0, %c0_i32_1 : i32, i32, i32
  }
  func.func @transform_4(%arg0: i32) -> (i32, i32) {
    %c0_i32 = arith.constant 0 : i32
    %c0_i32_0 = arith.constant 0 : i32
    return %c0_i32, %arg0 : i32, i32
  }
  func.func @transform_5(%arg0: i32) -> (i32, i32, i32) {
    %c0_i32 = arith.constant 0 : i32
    %c0_i32_0 = arith.constant 0 : i32
    %c0_i32_1 = arith.constant 0 : i32
    return %arg0, %c0_i32, %c0_i32_0 : i32, i32, i32
  }
  func.func @transform_6(%arg0: i32) -> (i32, i32, i32) {
    %c0_i32 = arith.constant 0 : i32
    %c0_i32_0 = arith.constant 0 : i32
    %c0_i32_1 = arith.constant 0 : i32
    return %arg0, %c0_i32, %c0_i32_0 : i32, i32, i32
  }
}

module attributes {stable_mosaic.version = 11 : i64} {
  func.func @_conv_stats_kernel(%arg0: i32, %arg1: memref<4x128xf32, #tpu.memory_space<vmem>>, %arg2: memref<3x8x4xbf16, #tpu.memory_space<vmem>>, %arg3: memref<8x128xf32, #tpu.memory_space<vmem>>, %arg4: memref<1x8x1xf32, #tpu.memory_space<vmem>>, %arg5: memref<1x8x1xf32, #tpu.memory_space<vmem>>) attributes {dimension_semantics = [#tpu.dimension_semantics<parallel>], iteration_bounds = array<i64: 2>, scalar_prefetch = 0 : i64, scratch_operands = 0 : i64, tpu.core_type = #tpu.core_type<tc>, window_params = [{transform_indices = @transform_0, window_bounds = array<i64: 4, 128>}, {pipeline_mode = #tpu.pipeline_mode<synchronous>, transform_indices = @transform_1, window_bounds = array<i64: 3, 8, 4>}, {transform_indices = @transform_2, window_bounds = array<i64: 8, 128>}, {transform_indices = @transform_3, window_bounds = array<i64: 1, 8, 1>}, {transform_indices = @transform_4, window_bounds = array<i64: 1, 8, 1>}]} {
    %c0 = arith.constant 0 : index
    %c0_0 = arith.constant 0 : index
    %0 = vector.load %arg1[%c0, %c0_0] : memref<4x128xf32, #tpu.memory_space<vmem>>, vector<4x128xf32>
    %1 = tpu.iota {dimensions = array<i32: 1>} : vector<1x128xi32>
    %c8_i32 = arith.constant 8 : i32
    %c0_i32 = arith.constant 0 : i32
    %2 = arith.cmpi eq, %c8_i32, %c0_i32 : i32
    %c1_i32 = arith.constant 1 : i32
    %3 = arith.select %2, %c1_i32, %c8_i32 : i32
    %4 = vector.broadcast %3 : i32 to vector<1x128xi32>
    %5 = arith.remsi %1, %4 : vector<1x128xi32>
    %c0_i32_1 = arith.constant 0 : i32
    %6 = vector.broadcast %c0_i32_1 : i32 to vector<1x128xi32>
    %7 = arith.cmpi ne, %5, %6 : vector<1x128xi32>
    %c0_i32_2 = arith.constant 0 : i32
    %8 = vector.broadcast %c0_i32_2 : i32 to vector<1x128xi32>
    %9 = arith.cmpi slt, %5, %8 : vector<1x128xi32>
    %c0_i32_3 = arith.constant 0 : i32
    %10 = arith.cmpi slt, %3, %c0_i32_3 : i32
    %11 = vector.broadcast %10 : i1 to vector<1x128xi1>
    %12 = vector.broadcast %11 : vector<1x128xi1> to vector<1x128xi1>
    %13 = arith.xori %9, %12 : vector<1x128xi1>
    %14 = arith.andi %13, %7 : vector<1x128xi1>
    %15 = vector.broadcast %3 : i32 to vector<1x128xi32>
    %16 = arith.addi %5, %15 : vector<1x128xi32>
    %17 = arith.select %14, %16, %5 : vector<1x128xi1>, vector<1x128xi32>
    %c1_i32_4 = arith.constant 1 : i32
    %18 = vector.broadcast %c1_i32_4 : i32 to vector<1x128xi32>
    %19 = arith.cmpi sge, %17, %18 : vector<1x128xi32>
    %c1_i32_5 = arith.constant 1 : i32
    %20 = tpu.dynamic_rotate %0 by %c1_i32_5 dim 1 : vector<4x128xf32>, i32 -> vector<4x128xf32>
    %cst = arith.constant 0.000000e+00 : f32
    %21 = vector.shape_cast %19 : vector<1x128xi1> to vector<1x128xi1>
    %22 = vector.broadcast %21 : vector<1x128xi1> to vector<4x128xi1>
    %23 = vector.broadcast %cst : f32 to vector<4x128xf32>
    %24 = arith.select %22, %20, %23 : vector<4x128xi1>, vector<4x128xf32>
    %c7_i32 = arith.constant 7 : i32
    %25 = vector.broadcast %c7_i32 : i32 to vector<1x128xi32>
    %26 = arith.cmpi slt, %17, %25 : vector<1x128xi32>
    %c127_i32 = arith.constant 127 : i32
    %27 = tpu.dynamic_rotate %0 by %c127_i32 dim 1 : vector<4x128xf32>, i32 -> vector<4x128xf32>
    %cst_6 = arith.constant 0.000000e+00 : f32
    %28 = vector.shape_cast %26 : vector<1x128xi1> to vector<1x128xi1>
    %29 = vector.broadcast %28 : vector<1x128xi1> to vector<4x128xi1>
    %30 = vector.broadcast %cst_6 : f32 to vector<4x128xf32>
    %31 = arith.select %29, %27, %30 : vector<4x128xi1>, vector<4x128xf32>
    %c1 = arith.constant 1 : index
    %c0_7 = arith.constant 0 : index
    %c0_8 = arith.constant 0 : index
    %32 = vector.load %arg2[%c1, %c0_7, %c0_8] : memref<3x8x4xbf16, #tpu.memory_space<vmem>>, vector<1x8x4xbf16>
    %33 = vector.shape_cast %32 : vector<1x8x4xbf16> to vector<8x4xbf16>
    %34 = arith.truncf %0 : vector<4x128xf32> to vector<4x128xbf16>
    %cst_9 = arith.constant dense<0.000000e+00> : vector<8x128xf32>
    %35 = tpu.matmul %33, %34, %cst_9 {dimension_numbers = #tpu.dot_dimension_numbers<[1], [0], [0], [1], [0, 0, 1, 1], [], []>} : vector<8x4xbf16>, vector<4x128xbf16>, vector<8x128xf32> -> vector<8x128xf32>
    %c0_10 = arith.constant 0 : index
    %c0_11 = arith.constant 0 : index
    %c0_12 = arith.constant 0 : index
    %36 = vector.load %arg2[%c0_10, %c0_11, %c0_12] : memref<3x8x4xbf16, #tpu.memory_space<vmem>>, vector<1x8x4xbf16>
    %37 = vector.shape_cast %36 : vector<1x8x4xbf16> to vector<8x4xbf16>
    %38 = arith.truncf %24 : vector<4x128xf32> to vector<4x128xbf16>
    %cst_13 = arith.constant dense<0.000000e+00> : vector<8x128xf32>
    %39 = tpu.matmul %37, %38, %cst_13 {dimension_numbers = #tpu.dot_dimension_numbers<[1], [0], [0], [1], [0, 0, 1, 1], [], []>} : vector<8x4xbf16>, vector<4x128xbf16>, vector<8x128xf32> -> vector<8x128xf32>
    %40 = arith.addf %35, %39 : vector<8x128xf32>
    %c2 = arith.constant 2 : index
    %c0_14 = arith.constant 0 : index
    %c0_15 = arith.constant 0 : index
    %41 = vector.load %arg2[%c2, %c0_14, %c0_15] : memref<3x8x4xbf16, #tpu.memory_space<vmem>>, vector<1x8x4xbf16>
    %42 = vector.shape_cast %41 : vector<1x8x4xbf16> to vector<8x4xbf16>
    %43 = arith.truncf %31 : vector<4x128xf32> to vector<4x128xbf16>
    %cst_16 = arith.constant dense<0.000000e+00> : vector<8x128xf32>
    %44 = tpu.matmul %42, %43, %cst_16 {dimension_numbers = #tpu.dot_dimension_numbers<[1], [0], [0], [1], [0, 0, 1, 1], [], []>} : vector<8x4xbf16>, vector<4x128xbf16>, vector<8x128xf32> -> vector<8x128xf32>
    %45 = arith.addf %40, %44 : vector<8x128xf32>
    %c0_17 = arith.constant 0 : index
    %c0_18 = arith.constant 0 : index
    %46 = vector.load %arg3[%c0_17, %c0_18] : memref<8x128xf32, #tpu.memory_space<vmem>>, vector<8x128xf32>
    tpu.vector_store %arg3[%c0_17, %c0_18], %45 {strides = array<i32>} : memref<8x128xf32, #tpu.memory_space<vmem>>, vector<8x128xf32>,
    %c128_i32 = arith.constant 128 : i32
    %47 = arith.muli %arg0, %c128_i32 : i32
    %48 = tpu.iota {dimensions = array<i32: 1>} : vector<1x128xi32>
    %49 = vector.broadcast %47 : i32 to vector<1x128xi32>
    %50 = arith.addi %49, %48 : vector<1x128xi32>
    %c256_i32 = arith.constant 256 : i32
    %51 = vector.broadcast %c256_i32 : i32 to vector<1x128xi32>
    %52 = arith.cmpi slt, %50, %51 : vector<1x128xi32>
    %cst_19 = arith.constant 0.000000e+00 : f32
    %53 = vector.shape_cast %52 : vector<1x128xi1> to vector<1x128xi1>
    %54 = vector.broadcast %53 : vector<1x128xi1> to vector<8x128xi1>
    %55 = vector.broadcast %cst_19 : f32 to vector<8x128xf32>
    %56 = arith.select %54, %45, %55 : vector<8x128xi1>, vector<8x128xf32>
    %cst_20 = arith.constant dense<0.000000e+00> : vector<8xf32>
    %57 = vector.multi_reduction <add>, %56, %cst_20 [1] : vector<8x128xf32> to vector<8xf32>
    %58 = vector.shape_cast %57 : vector<8xf32> to vector<8x1xf32>
    %59 = vector.shape_cast %58 : vector<8x1xf32> to vector<1x8x1xf32>
    %c0_21 = arith.constant 0 : index
    %c0_22 = arith.constant 0 : index
    %c0_23 = arith.constant 0 : index
    %60 = vector.load %arg4[%c0_21, %c0_22, %c0_23] : memref<1x8x1xf32, #tpu.memory_space<vmem>>, vector<1x8x1xf32>
    tpu.vector_store %arg4[%c0_21, %c0_22, %c0_23], %59 {strides = array<i32>} : memref<1x8x1xf32, #tpu.memory_space<vmem>>, vector<1x8x1xf32>,
    %61 = arith.mulf %56, %56 : vector<8x128xf32>
    %cst_24 = arith.constant dense<0.000000e+00> : vector<8xf32>
    %62 = vector.multi_reduction <add>, %61, %cst_24 [1] : vector<8x128xf32> to vector<8xf32>
    %63 = vector.shape_cast %62 : vector<8xf32> to vector<8x1xf32>
    %64 = vector.shape_cast %63 : vector<8x1xf32> to vector<1x8x1xf32>
    %c0_25 = arith.constant 0 : index
    %c0_26 = arith.constant 0 : index
    %c0_27 = arith.constant 0 : index
    %65 = vector.load %arg5[%c0_25, %c0_26, %c0_27] : memref<1x8x1xf32, #tpu.memory_space<vmem>>, vector<1x8x1xf32>
    tpu.vector_store %arg5[%c0_25, %c0_26, %c0_27], %64 {strides = array<i32>} : memref<1x8x1xf32, #tpu.memory_space<vmem>>, vector<1x8x1xf32>,
    return
  }
  func.func @transform_0(%arg0: i32) -> (i32, i32) {
    %c0_i32 = arith.constant 0 : i32
    %c0_i32_0 = arith.constant 0 : i32
    return %c0_i32, %arg0 : i32, i32
  }
  func.func @transform_1(%arg0: i32) -> (i32, i32, i32) {
    %c0_i32 = arith.constant 0 : i32
    %c0_i32_0 = arith.constant 0 : i32
    %c0_i32_1 = arith.constant 0 : i32
    %c0_i32_2 = arith.constant 0 : i32
    return %c0_i32, %c0_i32_0, %c0_i32_1 : i32, i32, i32
  }
  func.func @transform_2(%arg0: i32) -> (i32, i32) {
    %c0_i32 = arith.constant 0 : i32
    %c0_i32_0 = arith.constant 0 : i32
    return %c0_i32, %arg0 : i32, i32
  }
  func.func @transform_3(%arg0: i32) -> (i32, i32, i32) {
    %c0_i32 = arith.constant 0 : i32
    %c0_i32_0 = arith.constant 0 : i32
    %c0_i32_1 = arith.constant 0 : i32
    return %arg0, %c0_i32, %c0_i32_0 : i32, i32, i32
  }
  func.func @transform_4(%arg0: i32) -> (i32, i32, i32) {
    %c0_i32 = arith.constant 0 : i32
    %c0_i32_0 = arith.constant 0 : i32
    %c0_i32_1 = arith.constant 0 : i32
    return %arg0, %c0_i32, %c0_i32_0 : i32, i32, i32
  }
}

module attributes {stable_mosaic.version = 11 : i64} {
  func.func @_spatial_kernel(%arg0: i32, %arg1: memref<6x16x8xbf16, #tpu.memory_space<vmem>>, %arg2: memref<6x1x8xf32, #tpu.memory_space<vmem>>, %arg3: memref<6x1x8xf32, #tpu.memory_space<vmem>>, %arg4: memref<8x8xbf16, #tpu.memory_space<vmem>>, %arg5: memref<1x8xf32, #tpu.memory_space<vmem>>, %arg6: memref<8x8xbf16, #tpu.memory_space<vmem>>, %arg7: memref<1x8xf32, #tpu.memory_space<vmem>>, %arg8: memref<6x16x8xf32, #tpu.memory_space<vmem>>) attributes {dimension_semantics = [#tpu.dimension_semantics<parallel>], iteration_bounds = array<i64: 3>, scalar_prefetch = 0 : i64, scratch_operands = 0 : i64, tpu.core_type = #tpu.core_type<tc>, window_params = [{transform_indices = @transform_0, window_bounds = array<i64: 6, 16, 8>}, {transform_indices = @transform_1, window_bounds = array<i64: 6, 1, 8>}, {transform_indices = @transform_2, window_bounds = array<i64: 6, 1, 8>}, {pipeline_mode = #tpu.pipeline_mode<synchronous>, transform_indices = @transform_3, window_bounds = array<i64: 8, 8>}, {pipeline_mode = #tpu.pipeline_mode<synchronous>, transform_indices = @transform_4, window_bounds = array<i64: 1, 8>}, {pipeline_mode = #tpu.pipeline_mode<synchronous>, transform_indices = @transform_5, window_bounds = array<i64: 8, 8>}, {pipeline_mode = #tpu.pipeline_mode<synchronous>, transform_indices = @transform_6, window_bounds = array<i64: 1, 8>}, {transform_indices = @transform_7, window_bounds = array<i64: 6, 16, 8>}]} {
    %c0 = arith.constant 0 : index
    %c0_0 = arith.constant 0 : index
    %c0_1 = arith.constant 0 : index
    %0 = vector.load %arg1[%c0, %c0_0, %c0_1] : memref<6x16x8xbf16, #tpu.memory_space<vmem>>, vector<6x16x8xbf16>
    %1 = arith.extf %0 : vector<6x16x8xbf16> to vector<6x16x8xf32>
    %c0_2 = arith.constant 0 : index
    %c0_3 = arith.constant 0 : index
    %c0_4 = arith.constant 0 : index
    %2 = vector.load %arg2[%c0_2, %c0_3, %c0_4] : memref<6x1x8xf32, #tpu.memory_space<vmem>>, vector<6x1x8xf32>
    %3 = vector.broadcast %2 : vector<6x1x8xf32> to vector<6x16x8xf32>
    %4 = arith.mulf %1, %3 : vector<6x16x8xf32>
    %c0_5 = arith.constant 0 : index
    %c0_6 = arith.constant 0 : index
    %c0_7 = arith.constant 0 : index
    %5 = vector.load %arg3[%c0_5, %c0_6, %c0_7] : memref<6x1x8xf32, #tpu.memory_space<vmem>>, vector<6x1x8xf32>
    %6 = vector.broadcast %5 : vector<6x1x8xf32> to vector<6x16x8xf32>
    %7 = arith.addf %4, %6 : vector<6x16x8xf32>
    %cst = arith.constant 0.000000e+00 : f32
    %8 = vector.broadcast %cst : f32 to vector<6x16x8xf32>
    %9 = arith.maximumf %7, %8 : vector<6x16x8xf32>
    %10 = vector.shape_cast %9 : vector<6x16x8xf32> to vector<96x8xf32>
    %11 = arith.truncf %10 : vector<96x8xf32> to vector<96x8xbf16>
    %c0_8 = arith.constant 0 : index
    %c0_9 = arith.constant 0 : index
    %12 = vector.load %arg4[%c0_8, %c0_9] : memref<8x8xbf16, #tpu.memory_space<vmem>>, vector<8x8xbf16>
    %cst_10 = arith.constant dense<0.000000e+00> : vector<96x8xf32>
    %13 = tpu.matmul %11, %12, %cst_10 {dimension_numbers = #tpu.dot_dimension_numbers<[1], [0], [0], [1], [0, 0, 1, 1], [], []>} : vector<96x8xbf16>, vector<8x8xbf16>, vector<96x8xf32> -> vector<96x8xf32>
    %c0_11 = arith.constant 0 : index
    %c0_12 = arith.constant 0 : index
    %14 = vector.load %arg5[%c0_11, %c0_12] : memref<1x8xf32, #tpu.memory_space<vmem>>, vector<1x8xf32>
    %15 = vector.broadcast %14 : vector<1x8xf32> to vector<96x8xf32>
    %16 = arith.addf %13, %15 : vector<96x8xf32>
    %17 = vector.shape_cast %16 : vector<96x8xf32> to vector<6x16x8xf32>
    %18 = arith.truncf %17 : vector<6x16x8xf32> to vector<6x16x8xbf16>
    "tpu.trace_start"() <{level = 10 : i32, message = "bnf,bmf->bnm"}> : () -> ()
    %cst_13 = arith.constant dense<0.000000e+00> : vector<6x16x16xf32>
    %19 = tpu.matmul %18, %18, %cst_13 {dimension_numbers = #tpu.dot_dimension_numbers<[2], [2], [1], [1], [0, 0, 0, 1, 1, 1], [0], [0]>} : vector<6x16x8xbf16>, vector<6x16x8xbf16>, vector<6x16x16xf32> -> vector<6x16x16xf32>
    "tpu.trace_stop"() : () -> ()
    %20 = tpu.iota {dimensions = array<i32: 0>} : vector<16x16xi32>
    %21 = tpu.iota {dimensions = array<i32: 1>} : vector<16x16xi32>
    %22 = arith.cmpi eq, %20, %21 : vector<16x16xi32>
    %23 = arith.extui %22 : vector<16x16xi1> to vector<16x16xi32>
    %24 = arith.sitofp %23 : vector<16x16xi32> to vector<16x16xf32>
    %cst_14 = arith.constant 1.000000e+08 : f32
    %25 = vector.broadcast %cst_14 : f32 to vector<16x16xf32>
    %26 = arith.mulf %24, %25 : vector<16x16xf32>
    %27 = vector.shape_cast %26 : vector<16x16xf32> to vector<1x16x16xf32>
    %28 = vector.broadcast %27 : vector<1x16x16xf32> to vector<6x16x16xf32>
    %29 = arith.subf %19, %28 : vector<6x16x16xf32>
    %cst_15 = arith.constant 0.000000e+00 : f32
    %30 = vector.broadcast %cst_15 : f32 to vector<6x16x16xf32>
    %31 = arith.cmpf oge, %29, %30 : vector<6x16x16xf32>
    %cst_16 = arith.constant 0.00999999977 : f32
    %32 = vector.broadcast %cst_16 : f32 to vector<6x16x16xf32>
    %33 = arith.mulf %32, %29 : vector<6x16x16xf32>
    %34 = arith.select %31, %29, %33 : vector<6x16x16xi1>, vector<6x16x16xf32>
    %cst_17 = arith.constant dense<0xFF800000> : vector<6x16xf32>
    %35 = vector.multi_reduction <maximumf>, %34, %cst_17 [2] : vector<6x16x16xf32> to vector<6x16xf32>
    %36 = vector.shape_cast %35 : vector<6x16xf32> to vector<6x16x1xf32>
    %37 = vector.broadcast %36 : vector<6x16x1xf32> to vector<6x16x16xf32>
    %38 = arith.subf %34, %37 : vector<6x16x16xf32>
    %39 = math.exp %38 : vector<6x16x16xf32>
    %cst_18 = arith.constant dense<0.000000e+00> : vector<6x16xf32>
    %40 = vector.multi_reduction <add>, %39, %cst_18 [2] : vector<6x16x16xf32> to vector<6x16xf32>
    %41 = vector.shape_cast %40 : vector<6x16xf32> to vector<6x16x1xf32>
    %42 = tpu.reciprocal %41 {approx = true} : vector<6x16x1xf32> -> vector<6x16x1xf32>
    %43 = vector.broadcast %42 : vector<6x16x1xf32> to vector<6x16x16xf32>
    %44 = arith.mulf %39, %43 : vector<6x16x16xf32>
    %45 = vector.shape_cast %24 : vector<16x16xf32> to vector<1x16x16xf32>
    %46 = vector.broadcast %45 : vector<1x16x16xf32> to vector<6x16x16xf32>
    %47 = arith.addf %44, %46 : vector<6x16x16xf32>
    %48 = arith.truncf %47 : vector<6x16x16xf32> to vector<6x16x16xbf16>
    %49 = arith.truncf %9 : vector<6x16x8xf32> to vector<6x16x8xbf16>
    "tpu.trace_start"() <{level = 10 : i32, message = "bnm,bmf->bnf"}> : () -> ()
    %cst_19 = arith.constant dense<0.000000e+00> : vector<6x16x8xf32>
    %50 = tpu.matmul %48, %49, %cst_19 {dimension_numbers = #tpu.dot_dimension_numbers<[2], [1], [1], [2], [0, 0, 0, 1, 1, 2], [0], [0]>} : vector<6x16x16xbf16>, vector<6x16x8xbf16>, vector<6x16x8xf32> -> vector<6x16x8xf32>
    "tpu.trace_stop"() : () -> ()
    %51 = vector.shape_cast %50 : vector<6x16x8xf32> to vector<96x8xf32>
    %52 = arith.truncf %51 : vector<96x8xf32> to vector<96x8xbf16>
    %c0_20 = arith.constant 0 : index
    %c0_21 = arith.constant 0 : index
    %53 = vector.load %arg6[%c0_20, %c0_21] : memref<8x8xbf16, #tpu.memory_space<vmem>>, vector<8x8xbf16>
    %cst_22 = arith.constant dense<0.000000e+00> : vector<96x8xf32>
    %54 = tpu.matmul %52, %53, %cst_22 {dimension_numbers = #tpu.dot_dimension_numbers<[1], [0], [0], [1], [0, 0, 1, 1], [], []>} : vector<96x8xbf16>, vector<8x8xbf16>, vector<96x8xf32> -> vector<96x8xf32>
    %c0_23 = arith.constant 0 : index
    %c0_24 = arith.constant 0 : index
    %55 = vector.load %arg7[%c0_23, %c0_24] : memref<1x8xf32, #tpu.memory_space<vmem>>, vector<1x8xf32>
    %56 = vector.broadcast %55 : vector<1x8xf32> to vector<96x8xf32>
    %57 = arith.addf %54, %56 : vector<96x8xf32>
    %58 = vector.shape_cast %57 : vector<96x8xf32> to vector<6x16x8xf32>
    %59 = arith.addf %58, %9 : vector<6x16x8xf32>
    %cst_25 = arith.constant 0.000000e+00 : f32
    %60 = vector.broadcast %cst_25 : f32 to vector<6x16x8xf32>
    %61 = arith.cmpf oge, %59, %60 : vector<6x16x8xf32>
    %cst_26 = arith.constant 0.00999999977 : f32
    %62 = vector.broadcast %cst_26 : f32 to vector<6x16x8xf32>
    %63 = arith.mulf %62, %59 : vector<6x16x8xf32>
    %64 = arith.select %61, %59, %63 : vector<6x16x8xi1>, vector<6x16x8xf32>
    %c0_27 = arith.constant 0 : index
    %c0_28 = arith.constant 0 : index
    %c0_29 = arith.constant 0 : index
    %65 = vector.load %arg8[%c0_27, %c0_28, %c0_29] : memref<6x16x8xf32, #tpu.memory_space<vmem>>, vector<6x16x8xf32>
    tpu.vector_store %arg8[%c0_27, %c0_28, %c0_29], %64 {strides = array<i32>} : memref<6x16x8xf32, #tpu.memory_space<vmem>>, vector<6x16x8xf32>,
    return
  }
  func.func @transform_0(%arg0: i32) -> (i32, i32, i32) {
    %c0_i32 = arith.constant 0 : i32
    %c0_i32_0 = arith.constant 0 : i32
    %c0_i32_1 = arith.constant 0 : i32
    return %arg0, %c0_i32, %c0_i32_0 : i32, i32, i32
  }
  func.func @transform_1(%arg0: i32) -> (i32, i32, i32) {
    %c0_i32 = arith.constant 0 : i32
    %c0_i32_0 = arith.constant 0 : i32
    %c0_i32_1 = arith.constant 0 : i32
    return %arg0, %c0_i32, %c0_i32_0 : i32, i32, i32
  }
  func.func @transform_2(%arg0: i32) -> (i32, i32, i32) {
    %c0_i32 = arith.constant 0 : i32
    %c0_i32_0 = arith.constant 0 : i32
    %c0_i32_1 = arith.constant 0 : i32
    return %arg0, %c0_i32, %c0_i32_0 : i32, i32, i32
  }
  func.func @transform_3(%arg0: i32) -> (i32, i32) {
    %c0_i32 = arith.constant 0 : i32
    %c0_i32_0 = arith.constant 0 : i32
    %c0_i32_1 = arith.constant 0 : i32
    return %c0_i32, %c0_i32_0 : i32, i32
  }
  func.func @transform_4(%arg0: i32) -> (i32, i32) {
    %c0_i32 = arith.constant 0 : i32
    %c0_i32_0 = arith.constant 0 : i32
    %c0_i32_1 = arith.constant 0 : i32
    return %c0_i32, %c0_i32_0 : i32, i32
  }
  func.func @transform_5(%arg0: i32) -> (i32, i32) {
    %c0_i32 = arith.constant 0 : i32
    %c0_i32_0 = arith.constant 0 : i32
    %c0_i32_1 = arith.constant 0 : i32
    return %c0_i32, %c0_i32_0 : i32, i32
  }
  func.func @transform_6(%arg0: i32) -> (i32, i32) {
    %c0_i32 = arith.constant 0 : i32
    %c0_i32_0 = arith.constant 0 : i32
    %c0_i32_1 = arith.constant 0 : i32
    return %c0_i32, %c0_i32_0 : i32, i32
  }
  func.func @transform_7(%arg0: i32) -> (i32, i32, i32) {
    %c0_i32 = arith.constant 0 : i32
    %c0_i32_0 = arith.constant 0 : i32
    %c0_i32_1 = arith.constant 0 : i32
    return %arg0, %c0_i32, %c0_i32_0 : i32, i32, i32
  }
}

</mosaic_0001>

<bundles_post_ra>
// kernel: mpnn_block_seperate_forward.4
= control target key start
LH: loop header
LB: loop body
LE: loop exit
PB: predicated region body
PF: predicated region fallthrough
CT: control target
= control target key end

     0   :  { %s699_s21 = smov 0   ;;  %s757_s0 = inlined_call_operand.vmem [shape: f32[8,256], index: 0, kind: input, shape index: {}]   ;;  %s758_s1 = inlined_call_operand.vmem [shape: f32[8,1], index: 1, kind: input, shape index: {}]   ;;  %s759_s2 = inlined_call_operand.vmem [shape: f32[8,1], index: 2, kind: input, shape index: {}]   ;;  %s760_s3 = inlined_call_operand.vmem [shape: bf16[3,8,8], index: 3, kind: input, shape index: {}]   ;;  %s761_s4 = inlined_call_operand.vmem [shape: f32[8,256], index: 4, kind: output, shape index: {0}]   ;;  %s762_s5 = inlined_call_operand.vmem [shape: f32[2,8,1], index: 5, kind: output, shape index: {1}]   ;;  %s763_s6 = inlined_call_operand.vmem [shape: f32[2,8,1], index: 6, kind: output, shape index: {2}]  }
   0x1 LB: > { %s705_s22 = sadd.s32 4294967295, %s657_s21   ;;  %p595_p0 = scmp.ge.s32.totalorder %s657_s21, 1  ;;  %s657_s21 = sphi %s699_s21, %s17_s21  }
   0x2   : > { %p216_p1 = scmp.lt.s32.totalorder %s657_s21, 3 }
   0x4   : > { %p217_p2 = pnand %p595_p0, %p216_p1 }
   0x5   : > { %v270_v0 = vld [vmem:[%s758_s1] sm:$0xff] (!%p217_p2)  ;;  %v659_v1 = vmov (!%p217_p2), 0   ;;  %v660_v3 = vmov (!%p217_p2), 0.0   ;;  %vm661_vm0 = vmmov (!%p217_p2), 0   ;;  %p252_p3 = scmp.lt.s32.totalorder (!%p217_p2), %s705_s22, 1  ;;  %vm320_vm1 = vcmask (!%p217_p2), 1043456  }
   0x6   : > { %220 = sbr.rel (%p217_p2) target bundleno = 629 (0x275), region = 36  ;;  %650 = vset.pattern.permute.xlu0 (!%p217_p2), %v659_v1  ;;  %v277_v2 = vld [vmem:[%s759_s2] sm:$0xff] (!%p217_p2)  ;;  %620 = vmatprep.subr.bf16.mxu0 (!%p217_p2), %v660_v3  ;;  %s662_s8 = smov (!%p217_p2), 1   ;;  %vm316_vm2 = vcmask (!%p217_p2), 64512   ;;  %v285_v13 = vlaneseq (!%p217_p2)  ;;  %v603_v25 = vld [vmem:[%s760_s3 + $0x8] sm:$0xf] (!%p217_p2) }
   0x7   : > { %273 = vperm.xlu0 (!%p217_p2), %650, %v270_v0   ;;  %614 = vmatprep.subr.bf16.mxu1 (!%p217_p2), %v660_v3  ;;  %v600_v12 = vld [vmem:[%s760_s3 + $0x4] sm:$0xf] (!%p217_p2)  ;;  %s663_s11 = smov (!%p217_p2), 127   ;;  %v314_v22 = vld [vmem:[%s760_s3] sm:$0xf] (!%p217_p2)  ;;  %s605_s16 = sshll.u32 (!%p217_p2), %s705_s22, 7 }
   0x8   : > { %622 = vmatprep.mubr.msk.bf16.mxu0 (!%p217_p2), %vm661_vm0, %v660_v3  ;;  %616 = vmatprep.mubr.msk.bf16.mxu1 (!%p217_p2), %vm661_vm0, %v660_v3  ;;  %v286_v14 = vand.u32 (!%p217_p2), 127, %v285_v13  ;;  %v462_v26 = vstv (!%p217_p2), %s605_s16  ;;  %vm470_vm6 = vcmask (!%p217_p2), 7168  }
   0xa   : > { %v291_v15 = vand.u32 (!%p217_p2), 7, %v286_v14  ;;  %v463_v28 = vadd.s32 (!%p217_p2), %v462_v26, %v286_v14 }
   0xb   : > { %280 = vperm.xlu0 (!%p217_p2), %650, %v277_v2  }
   0xc   : > { %vm299_vm3 = vcmp.ge.s32.totalorder (!%p217_p2), %v291_v15, 1  ;;  %vm305_vm4 = vcmp.lt.s32.totalorder (!%p217_p2), %v291_v15, 7  ;;  %vm464_vm5 = vcmp.lt.s32.totalorder (!%p217_p2), %v463_v28, 256 }
   0xd   : > { %s253_s27 = scalar_select %p252_p3, %s705_s22, 1 }
   0xf   : > { %s719_s28 = sshll.u32 %s253_s27, 3 }
  0x10   : > { %s255_s7 = scalar_lea.vmem %s757_s0, %s719_s28  ;;  %s259_s19 = scalar_lea.vmem %s761_s4, %s719_s28 }
  0x11   : > { %v269_v5 = vld [vmem:[%s255_s7] sm:$0xff]  ;;  %s263_s23 = scalar_lea.vmem %s762_s5, %s719_s28  ;;  %s267_s26 = scalar_lea.vmem %s763_s6, %s719_s28 }
  0x86   : > { %v274_v4 = vpop.permute.xlu0 %273 }
  0x87   : > { %v276_v6 = vmul.f32 %v274_v4, %v269_v5 }
  0x8a   : > { %v281_v7 = vpop.permute.xlu0 %280 }
  0x8b   : > { %v283_v8 = vadd.f32 %v281_v7, %v276_v6 }
  0x8d   : > { %v284_v9 = vmax.f32 %v283_v8, 0.0 }
  0x8f   : > { %300 = vrot.lane.b32.xlu1 %v284_v9, %s662_s8  ;;  %v313_v10 = vpack.c.bf16 %v284_v9, %v284_v9 }
  0x91   : > { %v368_v11 = vsel %vm320_vm1, %v313_v10, 0 }
  0x92   : > { %621 = vmatpush3.bf16.msra.mxu0 %v368_v11 }
  0x93   : > { %306 = vrot.lane.b32.xlu1 %v284_v9, %s663_s11  ;;  %626 = vmatprep.subr.bf16.mxu0 %v660_v3 }
  0x95   : > { %623 = vmatmul.mubr.msk.bf16.vlgmr.msra.gmra.mrb[0].mxu0 %vm316_vm2, %v600_v12 }
  0x96   : > { %628 = vmatprep.mubr.msk.bf16.mxu0 %vm661_vm0, %v660_v3 }
 0x101   : > { %v301_v16 = vpop.permute.xlu1 %300 }
 0x102   : > { %v304_v17 = vsel %vm299_vm3, %v301_v16, 0.0 }
 0x103   : > { %v315_v18 = vpack.c.bf16 %v304_v17, %v304_v17 }
 0x105   : > { %v307_v19 = vpop.permute.xlu1 %306  ;;  %v322_v20 = vsel %vm320_vm1, %v315_v18, 0 }
 0x106   : > { %v310_v21 = vsel %vm305_vm4, %v307_v19, 0.0  ;;  %615 = vmatpush3.bf16.msra.mxu1 %v322_v20 }
 0x107   : > { %v412_v23 = vpack.c.bf16 %v310_v21, %v310_v21 }
 0x109   : > { %v417_v24 = vsel %vm320_vm1, %v412_v23, 0  ;;  %617 = vmatmul.mubr.msk.bf16.vlgmr.msra.gmra.mrb[0].mxu1 %vm316_vm2, %v314_v22 }
 0x10a   : > { %627 = vmatpush3.bf16.msra.mxu0 %v417_v24 }
 0x10d   : > { %629 = vmatmul.mubr.msk.bf16.vlgmr.msra.gmra.mrb[0].mxu0 %vm316_vm2, %v603_v25 }
 0x1dc   : > { %v358_v27 = vpop.f32.mrb[0].mxu1 }
 0x1dd   : > { %v618_v29 = vpop.f32.mrb[1].mxu1 }
 0x1de   : > { %v361_v30 = vpop.f32.mrb[2].mxu1 }
 0x1df   : > { %v619_v31 = vpop.f32.mrb[3].mxu1 }
 0x1e0   : > { %v453_v32 = vpop.f32.mrb[0].mxu0 }
 0x1e1   : > { %v632_v33 = vadd.f32 %v453_v32, %v358_v27  ;;  %v630_v34 = vpop.f32.mrb[1].mxu0 }
 0x1e2   : > { %v456_v35 = vpop.f32.mrb[2].mxu0 }
 0x1e3   : > { %460 = vst [vmem:[%s259_s19] sm:$0xff] %v632_v33  ;;  %v631_v36 = vpop.f32.mrb[3].mxu0  ;;  %v467_v37 = vsel %vm464_vm5, %v632_v33, 0.0 }
 0x1e4   : > { %468 = vadd.xlane.f32.xlu0 %v467_v37  ;;  %v472_v38 = vmul.f32 %v467_v37, %v467_v37 }
 0x1e6   : > { %473 = vadd.xlane.f32.xlu1 %v472_v38 }
 0x271   : > { %v469_v39 = vpop.xlane.xlu0 %468 }
 0x272   : > { %471 = vst.msk [vmem:[%s263_s23] sm:$0xff] %vm470_vm6, %v469_v39 }
 0x273   : > { %v474_v40 = vpop.xlane.xlu1 %473 }
 0x274   : > { %475 = vst.msk [vmem:[%s267_s26] sm:$0xff] %vm470_vm6, %v474_v40 }
 0x275 PF: > { %s17_s21 = sadd.s32 1, %s657_s21  }
 0x276   : > { %p14_p4 = scmp.ge.s32.totalorder %s17_s21, 4  }
 0x278   :  { %16 = sbr.rel (!%p14_p4) target bundleno = 1 (0x1), region = 92 }

// kernel: mpnn_block_seperate_forward.3
= control target key start
LH: loop header
LB: loop body
LE: loop exit
PB: predicated region body
PF: predicated region fallthrough
CT: control target
= control target key end

     0   :  { %s617_s15 = smov 0   ;;  %s667_s0 = inlined_call_operand.vmem [shape: f32[4,256], index: 0, kind: input, shape index: {}]   ;;  %s668_s1 = inlined_call_operand.vmem [shape: bf16[3,8,4], index: 1, kind: input, shape index: {}]   ;;  %s669_s2 = inlined_call_operand.vmem [shape: f32[8,256], index: 2, kind: output, shape index: {0}]   ;;  %s670_s3 = inlined_call_operand.vmem [shape: f32[2,8,1], index: 3, kind: output, shape index: {1}]   ;;  %s671_s4 = inlined_call_operand.vmem [shape: f32[2,8,1], index: 4, kind: output, shape index: {2}]  }
   0x1 LB: > { %s623_s16 = sadd.s32 4294967295, %s586_s15   ;;  %p526_p0 = scmp.ge.s32.totalorder %s586_s15, 1  ;;  %s586_s15 = sphi %s617_s15, %s15_s15  }
   0x2   : > { %p166_p1 = scmp.lt.s32.totalorder %s586_s15, 3 }
   0x4   : > { %p167_p2 = pnand %p526_p0, %p166_p1 }
   0x5   : > { %p198_p3 = scmp.lt.s32.totalorder (!%p167_p2), %s623_s16, 1  ;;  %v588_v0 = vmov (!%p167_p2), 0.0   ;;  %vm589_vm0 = vmmov (!%p167_p2), 0   ;;  %vm251_vm1 = vcmask (!%p167_p2), 1041408   ;;  %s590_s22 = smov (!%p167_p2), 1   ;;  %vm247_vm2 = vcmask (!%p167_p2), 31744  }
   0x6   : > { %170 = sbr.rel (%p167_p2) target bundleno = 506 (0x1fa), region = 28  ;;  %551 = vmatprep.subr.bf16.mxu0 (!%p167_p2), %v588_v0  ;;  %553 = vmatprep.mubr.msk.bf16.mxu0 (!%p167_p2), %vm589_vm0, %v588_v0  ;;  %v531_v4 = vld [vmem:[%s668_s1 + $0x4] sm:$0xf] (!%p167_p2)  ;;  %s591_s25 = smov (!%p167_p2), 127   ;;  %v216_v5 = vlaneseq (!%p167_p2)  ;;  %v245_v14 = vld [vmem:[%s668_s1] sm:$0xf] (!%p167_p2) }
   0x7   : > { %545 = vmatprep.subr.bf16.mxu1 (!%p167_p2), %v588_v0  ;;  %547 = vmatprep.mubr.msk.bf16.mxu1 (!%p167_p2), %vm589_vm0, %v588_v0  ;;  %v534_v17 = vld [vmem:[%s668_s1 + $0x8] sm:$0xf] (!%p167_p2)  ;;  %s536_s30 = sshll.u32 (!%p167_p2), %s623_s16, 7  ;;  %vm401_vm6 = vcmask (!%p167_p2), 7168  }
   0x8   : > { %v217_v6 = vand.u32 (!%p167_p2), 127, %v216_v5  ;;  %v393_v18 = vstv (!%p167_p2), %s536_s30 }
   0xa   : > { %v222_v7 = vand.u32 (!%p167_p2), 7, %v217_v6  ;;  %v394_v20 = vadd.s32 (!%p167_p2), %v393_v18, %v217_v6 }
   0xc   : > { %vm230_vm3 = vcmp.ge.s32.totalorder (!%p167_p2), %v222_v7, 1  ;;  %vm236_vm4 = vcmp.lt.s32.totalorder (!%p167_p2), %v222_v7, 7  ;;  %vm395_vm5 = vcmp.lt.s32.totalorder (!%p167_p2), %v394_v20, 256 }
   0xd   : > { %s630_s17 = scalar_select %p198_p3, %s623_s16, 1 }
   0xf   : > { %s527_s18 = sshll.u32 %s630_s17, 2  ;;  %s528_s5 = sshll.u32 %s630_s17, 3 }
  0x10   : > { %s201_s21 = scalar_lea.vmem %s667_s0, %s527_s18  ;;  %s205_s8 = scalar_lea.vmem %s669_s2, %s528_s5 }
  0x11   : > { %v215_v1 = vld [vmem:[%s201_s21] sm:$0xf]  ;;  %s209_s11 = scalar_lea.vmem %s670_s3, %s528_s5  ;;  %s213_s14 = scalar_lea.vmem %s671_s4, %s528_s5 }
  0x12   : > { %231 = vrot.lane.b32.xlu0 %v215_v1, %s590_s22  ;;  %v244_v2 = vpack.c.bf16 %v215_v1, %v215_v1 }
  0x14   : > { %v299_v3 = vsel %vm251_vm1, %v244_v2, 0 }
  0x15   : > { %552 = vmatpush3.bf16.msra.mxu0 %v299_v3 }
  0x16   : > { %237 = vrot.lane.b32.xlu0 %v215_v1, %s591_s25  ;;  %557 = vmatprep.subr.bf16.mxu0 %v588_v0 }
  0x18   : > { %554 = vmatmul.mubr.msk.bf16.vlgmr.msra.gmra.mrb[0].mxu0 %vm247_vm2, %v531_v4 }
  0x19   : > { %559 = vmatprep.mubr.msk.bf16.mxu0 %vm589_vm0, %v588_v0 }
  0x84   : > { %v232_v8 = vpop.permute.xlu0 %231 }
  0x85   : > { %v235_v9 = vsel %vm230_vm3, %v232_v8, 0.0 }
  0x86   : > { %v246_v10 = vpack.c.bf16 %v235_v9, %v235_v9 }
  0x88   : > { %v238_v11 = vpop.permute.xlu0 %237  ;;  %v253_v12 = vsel %vm251_vm1, %v246_v10, 0 }
  0x89   : > { %v241_v13 = vsel %vm236_vm4, %v238_v11, 0.0  ;;  %546 = vmatpush3.bf16.msra.mxu1 %v253_v12 }
  0x8a   : > { %v343_v15 = vpack.c.bf16 %v241_v13, %v241_v13 }
  0x8c   : > { %v348_v16 = vsel %vm251_vm1, %v343_v15, 0  ;;  %548 = vmatmul.mubr.msk.bf16.vlgmr.msra.gmra.mrb[0].mxu1 %vm247_vm2, %v245_v14 }
  0x8d   : > { %558 = vmatpush3.bf16.msra.mxu0 %v348_v16 }
  0x90   : > { %560 = vmatmul.mubr.msk.bf16.vlgmr.msra.gmra.mrb[0].mxu0 %vm247_vm2, %v534_v17 }
 0x15f   : > { %v289_v19 = vpop.f32.mrb[0].mxu1 }
 0x160   : > { %v549_v21 = vpop.f32.mrb[1].mxu1 }
 0x161   : > { %v292_v22 = vpop.f32.mrb[2].mxu1 }
 0x162   : > { %v550_v23 = vpop.f32.mrb[3].mxu1 }
 0x163   : > { %v384_v24 = vpop.f32.mrb[0].mxu0 }
 0x164   : > { %v563_v25 = vadd.f32 %v384_v24, %v289_v19  ;;  %v561_v26 = vpop.f32.mrb[1].mxu0 }
 0x165   : > { %v387_v27 = vpop.f32.mrb[2].mxu0 }
 0x166   : > { %391 = vst [vmem:[%s205_s8] sm:$0xff] %v563_v25  ;;  %v562_v28 = vpop.f32.mrb[3].mxu0  ;;  %v398_v29 = vsel %vm395_vm5, %v563_v25, 0.0 }
 0x167   : > { %399 = vadd.xlane.f32.xlu1 %v398_v29  ;;  %v403_v30 = vmul.f32 %v398_v29, %v398_v29 }
 0x16b   : > { %404 = vadd.xlane.f32.xlu1 %v403_v30 }
 0x1f4   : > { %v400_v31 = vpop.xlane.xlu1 %399 }
 0x1f5   : > { %402 = vst.msk [vmem:[%s209_s11] sm:$0xff] %vm401_vm6, %v400_v31 }
 0x1f8   : > { %v405_v32 = vpop.xlane.xlu1 %404 }
 0x1f9   : > { %406 = vst.msk [vmem:[%s213_s14] sm:$0xff] %vm401_vm6, %v405_v32 }
 0x1fa PF: > { %s15_s15 = sadd.s32 1, %s586_s15  }
 0x1fb   : > { %p12_p4 = scmp.ge.s32.totalorder %s15_s15, 4  }
 0x1fd   :  { %14 = sbr.rel (!%p12_p4) target bundleno = 1 (0x1), region = 84 }

// kernel: mpnn_block_seperate_forward.5
= control target key start
LH: loop header
LB: loop body
LE: loop exit
PB: predicated region body
PF: predicated region fallthrough
CT: control target
= control target key end

     0   :  { %s1916_s24 = smov 0   ;;  %s2343_s0 = inlined_call_operand.vmem [shape: bf16[18,16,8], index: 0, kind: input, shape index: {}]   ;;  %s2344_s1 = inlined_call_operand.vmem [shape: f32[18,1,8], index: 1, kind: input, shape index: {}]   ;;  %s2345_s2 = inlined_call_operand.vmem [shape: f32[18,1,8], index: 2, kind: input, shape index: {}]   ;;  %s2346_s3 = inlined_call_operand.vmem [shape: bf16[8,8], index: 3, kind: input, shape index: {}]   ;;  %s2347_s4 = inlined_call_operand.vmem [shape: f32[1,8], index: 4, kind: input, shape index: {}]   ;;  %s2348_s5 = inlined_call_operand.vmem [shape: bf16[8,8], index: 5, kind: input, shape index: {}]   ;;  %s2349_s6 = inlined_call_operand.vmem [shape: f32[1,8], index: 6, kind: input, shape index: {}]   ;;  %s2350_s7 = inlined_call_operand.vmem [shape: f32[18,16,8], index: 7, kind: output, shape index: {}]  }
   0x1 LB: > { %s1586_s25 = sadd.s32 4294967295, %s1872_s24   ;;  %p1590_p0 = scmp.ge.s32.totalorder %s1872_s24, 1  ;;  %s1872_s24 = sphi %s1916_s24, %s17_s24  }
   0x2   : > { %p259_p1 = scmp.lt.s32.totalorder %s1872_s24, 4 }
   0x4   : > { %p260_p2 = pnand %p1590_p0, %p259_p1 }
   0x5   : > { %v476_v0 = vld [vmem:[%s2346_s3] sm:$0xf] (!%p260_p2)  ;;  %vm503_vm0 = vcmask (!%p260_p2), 1043456   ;;  %s301_s28 = smul.u32 (!%p260_p2), 6, %s1586_s25  ;;  %vm484_vm1 = vcmask (!%p260_p2), 64512   ;;  %vm1875_vm2 = vmmov (!%p260_p2), 0  }
   0x6   : > { %263 = sbr.rel (%p260_p2) target bundleno = 1254 (0x4e6), region = 48  ;;  %1806 = vmatprep.subr.msk.bf16.mxu0 (!%p260_p2), %vm503_vm0, %v476_v0  ;;  %v505_v1 = vsel (!%p260_p2), %vm503_vm0, %v476_v0, 0  ;;  %vm919_vm6 = vcmask (!%p260_p2), 130048  }
   0x7   : > { %1707 = vmatpush3.bf16.msra.mxu0 (!%p260_p2), %v505_v1  ;;  %p302_p3 = scmp.lt.s32.totalorder (!%p260_p2), %s301_s28, 17 }
   0xd   : > { %s2352_s28 = smov (!%p302_p3, %s301_s28), 17 }
   0xe   : > { %s1637_s29 = sshll.u32 %s2352_s28, 3  ;;  %s1936_s9 = scalar_lea.vmem %s2344_s1, %s2352_s28 }
   0xf   : > { %s1941_s12 = scalar_lea.vmem %s2343_s0, %s1637_s29  ;;  %s1947_s15 = scalar_lea.vmem %s2345_s2, %s2352_s28  ;;  %v1595_v2 = vld [vmem:[%s1936_s9] ss:$0 sm:$0xff]  ;;  %v1596_v5 = vld [vmem:[%s1936_s9 + $0x1] ss:$0 sm:$0xff]  ;;  %v1597_v11 = vld [vmem:[%s1936_s9 + $0x2] ss:$0 sm:$0xff] }
  0x10   : > { %v1640_v3 = vld [vmem:[%s1941_s12] sm:$0xff]   ;;  %v1663_v4 = vld [vmem:[%s1941_s12 + $0x8] sm:$0xff]   ;;  %v1664_v10 = vld [vmem:[%s1941_s12 + $0x10] sm:$0xff]   ;;  %s1638_s22 = sshll.u32 %s2352_s28, 4 }
  0x11   : > { %v1641_v6 = vunpack.c.l.bf16 %v1640_v3  ;;  %v1642_v7 = vunpack.c.h.bf16 %v1640_v3  ;;  %v1645_v8 = vunpack.c.l.bf16 %v1663_v4  ;;  %v1646_v9 = vunpack.c.h.bf16 %v1663_v4  ;;  %v1601_v12 = vld [vmem:[%s1947_s15] ss:$0 sm:$0xff]  ;;  %v1602_v13 = vld [vmem:[%s1947_s15 + $0x1] ss:$0 sm:$0xff]  ;;  %v1665_v16 = vld [vmem:[%s1941_s12 + $0x18] sm:$0xff]   ;;  %s2286_s26 = scalar_lea.vmem %s2350_s7, %s1638_s22 }
  0x12   : > { %v1649_v14 = vunpack.c.l.bf16 %v1664_v10  ;;  %v1650_v15 = vunpack.c.h.bf16 %v1664_v10  ;;  %v1603_v21 = vld [vmem:[%s1947_s15 + $0x2] ss:$0 sm:$0xff]  ;;  %v1598_v22 = vld [vmem:[%s1936_s9 + $0x3] ss:$0 sm:$0xff]  ;;  %v1653_v25 = vunpack.c.l.bf16 %v1665_v16  ;;  %v1654_v26 = vunpack.c.h.bf16 %v1665_v16  ;;  %v1667_v41 = vld [vmem:[%s1941_s12 + $0x28] sm:$0xff]  }
  0x13   : > { %v392_v17 = vmul.f32 %v1641_v6, %v1595_v2  ;;  %v393_v18 = vmul.f32 %v1642_v7, %v1595_v2  ;;  %v394_v19 = vmul.f32 %v1645_v8, %v1596_v5  ;;  %v395_v20 = vmul.f32 %v1646_v9, %v1596_v5  ;;  %v1604_v31 = vld [vmem:[%s1947_s15 + $0x3] ss:$0 sm:$0xff]  ;;  %v1599_v46 = vld [vmem:[%s1936_s9 + $0x4] ss:$0 sm:$0xff]  ;;  %v1600_v51 = vld [vmem:[%s1936_s9 + $0x5] ss:$0 sm:$0xff] }
  0x14   : > { %v396_v23 = vmul.f32 %v1649_v14, %v1597_v11  ;;  %v397_v24 = vmul.f32 %v1650_v15, %v1597_v11  ;;  %v398_v34 = vmul.f32 %v1653_v25, %v1598_v22  ;;  %v399_v35 = vmul.f32 %v1654_v26, %v1598_v22  ;;  %v1666_v36 = vld [vmem:[%s1941_s12 + $0x20] sm:$0xff]  }
  0x15   : > { %v1960_v27 = vadd.f32 %v1601_v12, %v392_v17  ;;  %v1962_v28 = vadd.f32 %v1601_v12, %v393_v18  ;;  %v1964_v29 = vadd.f32 %v1602_v13, %v394_v19  ;;  %v1966_v30 = vadd.f32 %v1602_v13, %v395_v20  ;;  %v1605_v53 = vld [vmem:[%s1947_s15 + $0x4] ss:$0 sm:$0xff]  ;;  %v1606_v0 = vld [vmem:[%s1947_s15 + $0x5] ss:$0 sm:$0xff]  ;;  %v1607_v12 = vld [vmem:[%s2347_s4] ss:$0 sm:$0xff] }
  0x16   : > { %v1969_v32 = vadd.f32 %v1603_v21, %v396_v23  ;;  %v1971_v33 = vadd.f32 %v1603_v21, %v397_v24  ;;  %v1981_v44 = vadd.f32 %v1604_v31, %v398_v34  ;;  %v1983_v45 = vadd.f32 %v1604_v31, %v399_v35 }
  0x17   : > { %v458_v37 = vmax.f32 %v1960_v27, 0.0  ;;  %v459_v38 = vmax.f32 %v1962_v28, 0.0  ;;  %v460_v39 = vmax.f32 %v1964_v29, 0.0  ;;  %v461_v40 = vmax.f32 %v1966_v30, 0.0 }
  0x18   : > { %v462_v42 = vmax.f32 %v1969_v32, 0.0  ;;  %v463_v43 = vmax.f32 %v1971_v33, 0.0  ;;  %v1657_v49 = vunpack.c.l.bf16 %v1666_v36  ;;  %v1658_v50 = vunpack.c.h.bf16 %v1666_v36 }
  0x19   : > { %v1990_v47 = vpack.c.bf16 %v459_v38, %v458_v37  ;;  %v1996_v48 = vpack.c.bf16 %v461_v40, %v460_v39  ;;  %v1661_v54 = vunpack.c.l.bf16 %v1667_v41  ;;  %v1662_v57 = vunpack.c.h.bf16 %v1667_v41 }
  0x1a   : > { %v2003_v52 = vpack.c.bf16 %v463_v43, %v462_v42  ;;  %v400_v55 = vmul.f32 %v1657_v49, %v1599_v46  ;;  %v401_v56 = vmul.f32 %v1658_v50, %v1599_v46  ;;  %v464_v58 = vmax.f32 %v1981_v44, 0.0 }
  0x1b   : > { %1708 = vmatprep.mubr.msk.bf16.mxu0 %vm484_vm1, %v1990_v47  ;;  %v465_v59 = vmax.f32 %v1983_v45, 0.0  ;;  %v402_v60 = vmul.f32 %v1661_v54, %v1600_v51  ;;  %v403_v63 = vmul.f32 %v1662_v57, %v1600_v51  ;;  %v1874_v10 = vmov 0.0  }
  0x1c   : > { %1709 = vmatmul.mubr.msk.bf16.vlgmr.msra.gmra.mrb[0].mxu0 %vm484_vm1, %v1996_v48  ;;  %v2014_v61 = vadd.f32 %v1605_v53, %v400_v55  ;;  %v2016_v62 = vadd.f32 %v1605_v53, %v401_v56  ;;  %1726 = vmatprep.subr.bf16.mxu1 %v1874_v10 }
  0x1d   : > { %1712 = vmatprep.mubr.msk.bf16.mxu0 %vm484_vm1, %v2003_v52  ;;  %v2025_v3 = vpack.c.bf16 %v465_v59, %v464_v58  ;;  %v2027_v4 = vadd.f32 %v1606_v0, %v402_v60  ;;  %v2029_v5 = vadd.f32 %v1606_v0, %v403_v63  ;;  %1720 = vmatprep.subr.bf16.mxu0 %v1874_v10 }
  0x1e   : > { %v466_v1 = vmax.f32 %v2014_v61, 0.0  ;;  %v467_v2 = vmax.f32 %v2016_v62, 0.0  ;;  %1728 = vmatprep.mubr.msk.bf16.mxu1 %vm1875_vm2, %v1874_v10 }
  0x1f   : > { %v468_v7 = vmax.f32 %v2027_v4, 0.0  ;;  %v469_v8 = vmax.f32 %v2029_v5, 0.0 }
  0x20   : > { %v2035_v6 = vpack.c.bf16 %v467_v2, %v466_v1 }
  0x21   : > { %v2047_v9 = vpack.c.bf16 %v469_v8, %v468_v7 }
  0x24   : > { %1713 = vmatmul.mubr.msk.bf16.gmra.mrb[4].mxu0 %vm484_vm1, %v2025_v3 }
  0x25   : > { %1716 = vmatprep.mubr.msk.bf16.mxu0 %vm484_vm1, %v2035_v6 }
  0x2c   : > { %1717 = vmatmul.mubr.msk.bf16.gmra.mrb[8].mxu0 %vm484_vm1, %v2047_v9 }
  0x2d   : > { %1722 = vmatprep.mubr.msk.bf16.mxu0 %vm1875_vm2, %v1874_v10 }
  0xef   : > { %v1710_v11 = vpop.f32.mrb[0].mxu0 }
  0xf0   : > { %v541_v13 = vpop.f32.mrb[1].mxu0  ;;  %v550_v15 = vadd.f32 %v1710_v11, %v1607_v12 }
  0xf1   : > { %v1711_v14 = vpop.f32.mrb[2].mxu0  ;;  %v542_v18 = vadd.f32 %v1607_v12, %v541_v13 }
  0xf2   : > { %v553_v16 = vadd.f32 %v1711_v14, %v1607_v12  ;;  %v544_v17 = vpop.f32.mrb[3].mxu0 }
  0xf3   : > { %v545_v19 = vadd.f32 %v1607_v12, %v544_v17 }
  0xf4   : > { %v589_v20 = vpack.c.bf16 %v553_v16, %v550_v15 }
  0xf5   : > { %v588_v21 = vpack.c.bf16 %v545_v19, %v542_v18 }
  0xf6   : > { %v639_v22 = vsel %vm484_vm1, %v589_v20, 0 }
  0xf7   : > { %v1714_v23 = vpop.f32.mrb[4].mxu0  ;;  %1727 = vmatpush3.bf16.xpose.msra.mxu1 %v639_v22  ;;  %v595_v24 = vsel %vm484_vm1, %v588_v21, 0 }
  0xf8   : > { %v566_v25 = vadd.f32 %v1714_v23, %v1607_v12  ;;  %v557_v26 = vpop.f32.mrb[5].mxu0  ;;  %1721 = vmatpush3.bf16.xpose.msra.mxu0 %v595_v24  ;;  %1732 = vmatprep.subr.bf16.mxu1 %v1874_v10 }
  0xf9   : > { %v558_v31 = vadd.f32 %v1607_v12, %v557_v26  ;;  %v1715_v34 = vpop.f32.mrb[6].mxu0  ;;  %1738 = vmatprep.subr.bf16.mxu0 %v1874_v10 }
  0xfa   : > { %v569_v35 = vadd.f32 %v1715_v34, %v1607_v12  ;;  %v560_v36 = vpop.f32.mrb[7].mxu0 }
  0xfb   : > { %v561_v41 = vadd.f32 %v1607_v12, %v560_v36 }
  0xfc   : > { %v591_v46 = vpack.c.bf16 %v569_v35, %v566_v25 }
  0xfd   : > { %v590_v49 = vpack.c.bf16 %v561_v41, %v558_v31 }
  0xfe   : > { %1729 = vmatmul.mubr.msk.bf16.vlgmr.msra.gmra.mrb[0].mxu1 %vm484_vm1, %v589_v20  ;;  %v727_v50 = vsel %vm484_vm1, %v591_v46, 0 }
  0xff   : > { %v1718_v51 = vpop.f32.mrb[8].mxu0  ;;  %1723 = vmatmul.mubr.msk.bf16.vlgmr.msra.gmra.mrb[12].mxu0 %vm484_vm1, %v588_v21  ;;  %v683_v53 = vsel %vm484_vm1, %v590_v49, 0  ;;  %1734 = vmatprep.mubr.msk.bf16.mxu1 %vm1875_vm2, %v1874_v10 }
 0x100   : > { %v582_v54 = vadd.f32 %v1718_v51, %v1607_v12  ;;  %v573_v55 = vpop.f32.mrb[9].mxu0  ;;  %1733 = vmatpush3.bf16.xpose.msra.mxu1 %v683_v53  ;;  %1739 = vmatpush3.bf16.xpose.msra.mxu0 %v727_v50 }
 0x101   : > { %v574_v56 = vadd.f32 %v1607_v12, %v573_v55  ;;  %v1719_v57 = vpop.f32.mrb[10].mxu0  ;;  %1744 = vmatprep.subr.bf16.mxu1 %v1874_v10  ;;  %1740 = vmatprep.mubr.msk.bf16.mxu0 %vm1875_vm2, %v1874_v10 }
 0x102   : > { %v585_v60 = vadd.f32 %v1719_v57, %v1607_v12  ;;  %v576_v63 = vpop.f32.mrb[11].mxu0  ;;  %1750 = vmatprep.subr.bf16.mxu0 %v1874_v10 }
 0x103   : > { %v577_v0 = vadd.f32 %v1607_v12, %v576_v63  ;;  %v858_v12 = vlaneseq }
 0x104   : > { %v593_v11 = vpack.c.bf16 %v585_v60, %v582_v54 }
 0x105   : > { %v592_v13 = vpack.c.bf16 %v577_v0, %v574_v56  ;;  %v859_v16 = vshrl.u32 %v858_v12, 7  ;;  %v862_v17 = vand.u32 127, %v858_v12 }
 0x106   : > { %v815_v14 = vsel %vm484_vm1, %v593_v11, 0 }
 0x107   : > { %1735 = vmatmul.mubr.msk.bf16.vlgmr.msra.gmra.mrb[4].mxu1 %vm484_vm1, %v590_v49  ;;  %v771_v15 = vsel %vm484_vm1, %v592_v13, 0  ;;  %1741 = vmatmul.mubr.msk.bf16.vlgmr.msra.gmra.mrb[16].mxu0 %vm484_vm1, %v591_v46  ;;  %v860_v18 = vadd.s32 8, %v859_v16  ;;  %vm863_vm3 = vcmp.eq.s32.totalorder %v859_v16, %v862_v17 }
 0x108   : > { %1745 = vmatpush3.bf16.xpose.msra.mxu1 %v771_v15  ;;  %1751 = vmatpush3.bf16.xpose.msra.mxu0 %v815_v14 }
 0x109   : > { %1746 = vmatprep.mubr.msk.bf16.mxu1 %vm1875_vm2, %v1874_v10  ;;  %1752 = vmatprep.mubr.msk.bf16.mxu0 %vm1875_vm2, %v1874_v10  ;;  %vm864_vm4 = vcmp.eq.s32.totalorder %v860_v18, %v862_v17 }
 0x10a   : > { %1756 = vmatprep.subr.bf16.mxu1 %v1874_v10  ;;  %1762 = vmatprep.subr.bf16.mxu0 %v1874_v10  ;;  %v2098_v19 = vsel %vm864_vm4, 1.0, %v1874_v10 }
 0x10b   : > { %v2104_v20 = vmul.f32 1e+08, %v2098_v19 }
 0x10f   : > { %1747 = vmatmul.mubr.msk.bf16.vlgmr.msra.gmra.mrb[8].mxu1 %vm484_vm1, %v592_v13  ;;  %1753 = vmatmul.mubr.msk.bf16.vlgmr.msra.gmra.mrb[20].mxu0 %vm484_vm1, %v593_v11 }
 0x110   : > { %1757 = vmatpush3.bf16.msra.mxu1 %v1990_v47  ;;  %1758 = vmatprep.mubr.msk.bf16.mxu1 %vm1875_vm2, %v1874_v10  ;;  %v2095_v47 = vsel %vm863_vm3, 1.0, %v1874_v10 }
 0x111   : > { %1763 = vmatpush3.bf16.msra.mxu0 %v1996_v48  ;;  %1764 = vmatprep.mubr.msk.bf16.mxu0 %vm1875_vm2, %v1874_v10  ;;  %v2101_v48 = vmul.f32 1e+08, %v2095_v47 }
 0x112   : > { %1768 = vmatprep.subr.bf16.mxu1 %v1874_v10  ;;  %1774 = vmatprep.subr.bf16.mxu0 %v1874_v10 }
 0x1d1   : > { %v675_v21 = vpop.f32.mrb[0].mxu1 }
 0x1d2   : > { %v873_v22 = vsub.f32 %v675_v21, %v2101_v48  ;;  %v631_v23 = vpop.f32.mrb[12].mxu0  ;;  %v1730_v24 = vpop.f32.mrb[1].mxu1 }
 0x1d3   : > { %v871_v25 = vsub.f32 %v631_v23, %v2101_v48  ;;  %v1724_v26 = vpop.f32.mrb[13].mxu0  ;;  %v678_v31 = vpop.f32.mrb[2].mxu1 }
 0x1d4   : > { %v897_v34 = vmul.f32 0.01, %v873_v22  ;;  %v874_v35 = vsub.f32 %v678_v31, %v2104_v20  ;;  %v634_v36 = vpop.f32.mrb[14].mxu0  ;;  %v1731_v41 = vpop.f32.mrb[3].mxu1  ;;  %vm885_vm5 = vcmp.ge.f32.partialorder %v873_v22, 0.0 }
 0x1d5   : > { %v895_v46 = vmul.f32 0.01, %v871_v25  ;;  %v872_v49 = vsub.f32 %v634_v36, %v2104_v20  ;;  %v1725_v50 = vpop.f32.mrb[15].mxu0  ;;  %vm883_vm7 = vcmp.ge.f32.partialorder %v871_v25, 0.0 }
 0x1d6   : > { %v898_v51 = vmul.f32 0.01, %v874_v35  ;;  %v2110_v53 = vsel %vm885_vm5, %v873_v22, %v897_v34  ;;  %vm886_vm8 = vcmp.ge.f32.partialorder %v874_v35, 0.0 }
 0x1d7   : > { %v896_v54 = vmul.f32 0.01, %v872_v49  ;;  %v926_v55 = vsel %vm919_vm6, %v2110_v53, -inf  ;;  %v2114_v56 = vsel %vm883_vm7, %v871_v25, %v895_v46  ;;  %vm884_vm9 = vcmp.ge.f32.partialorder %v872_v49, 0.0 }
 0x1d8   : > { %927 = vmax.xlane.f32.xlu1 %v926_v55  ;;  %v920_v57 = vsel %vm919_vm6, %v2114_v56, -inf  ;;  %v2118_v60 = vsel %vm886_vm8, %v874_v35, %v898_v51 }
 0x1d9   : > { %921 = vmax.xlane.f32.xlu0 %v920_v57  ;;  %v2120_v63 = vsel %vm884_vm9, %v872_v49, %v896_v54  ;;  %v929_v15 = vsel %vm919_vm6, %v2118_v60, -inf }
 0x1da   : > { %v719_v0 = vpop.f32.mrb[4].mxu1  ;;  %v763_v11 = vpop.f32.mrb[16].mxu0  ;;  %v923_v18 = vsel %vm919_vm6, %v2120_v63, -inf }
 0x1db   : > { %v875_v13 = vsub.f32 %v719_v0, %v2101_v48  ;;  %v1736_v14 = vpop.f32.mrb[5].mxu1  ;;  %v877_v12 = vsub.f32 %v763_v11, %v2101_v48  ;;  %v1742_v16 = vpop.f32.mrb[17].mxu0 }
 0x1dc   : > { %930 = vmax.xlane.f32.xlu1 %v929_v15  ;;  %v722_v17 = vpop.f32.mrb[6].mxu1  ;;  %v766_v21 = vpop.f32.mrb[18].mxu0 }
 0x1dd   : > { %v899_v22 = vmul.f32 0.01, %v875_v13  ;;  %v876_v23 = vsub.f32 %v722_v17, %v2104_v20  ;;  %924 = vmax.xlane.f32.xlu0 %v923_v18  ;;  %v901_v24 = vmul.f32 0.01, %v877_v12  ;;  %v878_v25 = vsub.f32 %v766_v21, %v2104_v20  ;;  %v1737_v26 = vpop.f32.mrb[7].mxu1  ;;  %v1743_v31 = vpop.f32.mrb[19].mxu0 }
 0x1de   : > { %vm887_vm10 = vcmp.ge.f32.partialorder %v875_v13, 0.0  ;;  %vm889_vm11 = vcmp.ge.f32.partialorder %v877_v12, 0.0 }
 0x1df   : > { %v900_v34 = vmul.f32 0.01, %v876_v23  ;;  %v902_v35 = vmul.f32 0.01, %v878_v25  ;;  %v2130_v36 = vsel %vm887_vm10, %v875_v13, %v899_v22  ;;  %vm888_vm12 = vcmp.ge.f32.partialorder %v876_v23, 0.0 }
 0x1e0   : > { %v932_v41 = vsel %vm919_vm6, %v2130_v36, -inf  ;;  %vm890_vm13 = vcmp.ge.f32.partialorder %v878_v25, 0.0  ;;  %v2136_v49 = vsel %vm889_vm11, %v877_v12, %v901_v24 }
 0x1e1   : > { %933 = vmax.xlane.f32.xlu0 %v932_v41  ;;  %v2134_v46 = vsel %vm888_vm12, %v876_v23, %v900_v34  ;;  %v2142_v13 = vsel %vm890_vm13, %v878_v25, %v902_v35  ;;  %v938_v15 = vsel %vm919_vm6, %v2136_v49, -inf }
 0x1e2   : > { %v807_v50 = vpop.f32.mrb[8].mxu1  ;;  %v935_v51 = vsel %vm919_vm6, %v2134_v46, -inf  ;;  %v851_v54 = vpop.f32.mrb[20].mxu0 }
 0x1e3   : > { %v879_v55 = vsub.f32 %v807_v50, %v2101_v48  ;;  %936 = vmax.xlane.f32.xlu1 %v935_v51  ;;  %v1748_v57 = vpop.f32.mrb[9].mxu1  ;;  %v881_v0 = vsub.f32 %v851_v54, %v2101_v48  ;;  %v1754_v11 = vpop.f32.mrb[21].mxu0  ;;  %v941_v48 = vsel %vm919_vm6, %v2142_v13, -inf }
 0x1e4   : > { %v810_v14 = vpop.f32.mrb[10].mxu1  ;;  %v854_v12 = vpop.f32.mrb[22].mxu0 }
 0x1e5   : > { %v903_v16 = vmul.f32 0.01, %v879_v55  ;;  %v880_v17 = vsub.f32 %v810_v14, %v2104_v20  ;;  %939 = vmax.xlane.f32.xlu0 %v938_v15  ;;  %v905_v18 = vmul.f32 0.01, %v881_v0  ;;  %v882_v21 = vsub.f32 %v854_v12, %v2104_v20  ;;  %v1749_v22 = vpop.f32.mrb[11].mxu1  ;;  %v1755_v23 = vpop.f32.mrb[23].mxu0 }
 0x1e6   : > { %vm891_vm14 = vcmp.ge.f32.partialorder %v879_v55, 0.0  ;;  %vm893_vm15 = vcmp.ge.f32.partialorder %v881_v0, 0.0 }
 0x1e7   : > { %v904_v24 = vmul.f32 0.01, %v880_v17  ;;  %942 = vmax.xlane.f32.xlu1 %v941_v48  ;;  %v906_v25 = vmul.f32 0.01, %v882_v21  ;;  %v915_v26 = vsel %vm891_vm14, %v879_v55, %v903_v16  ;;  %vm892_vm3 = vcmp.ge.f32.partialorder %v880_v17, 0.0 }
 0x1e8   : > { %v944_v31 = vsel %vm919_vm6, %v915_v26, -inf  ;;  %vm894_vm4 = vcmp.ge.f32.partialorder %v882_v21, 0.0  ;;  %v917_v35 = vsel %vm893_vm15, %v881_v0, %v905_v18 }
 0x1e9   : > { %945 = vmax.xlane.f32.xlu0 %v944_v31  ;;  %v916_v34 = vsel %vm892_vm3, %v880_v17, %v904_v24  ;;  %v2152_v41 = vsel %vm894_vm4, %v882_v21, %v906_v25  ;;  %v950_v50 = vsel %vm919_vm6, %v917_v35, -inf }
 0x1ea   : > { %v947_v20 = vsel %vm919_vm6, %v916_v34, -inf  ;;  %v953_v51 = vsel %vm919_vm6, %v2152_v41, -inf }
 0x1eb   : > { %948 = vmax.xlane.f32.xlu1 %v947_v20 }
 0x1ed   : > { %951 = vmax.xlane.f32.xlu0 %v950_v50 }
 0x1ef   : > { %954 = vmax.xlane.f32.xlu1 %v953_v51 }
 0x265   : > { %v928_v54 = vpop.xlane.xlu1 %927 }
 0x266   : > { %v958_v55 = vsub.f32 %v2110_v53, %v928_v54  ;;  %v922_v57 = vpop.xlane.xlu0 %921 }
 0x267   : > { %v956_v11 = vsub.f32 %v2114_v56, %v922_v57 }
 0x268   : > { %v972_v14 = vmul.f32 1.442695, %v958_v55 }
 0x269   : > { %v968_v0 = vmul.f32 1.442695, %v956_v11  ;;  %v931_v15 = vpop.xlane.xlu1 %930 }
 0x26a   : > { %v959_v12 = vsub.f32 %v2118_v60, %v931_v15  ;;  %v925_v16 = vpop.xlane.xlu0 %924 }
 0x26b   : > { %1818 = vpow2.f32 %v968_v0  ;;  %v957_v17 = vsub.f32 %v2120_v63, %v925_v16 }
 0x26c   : > { %1820 = vpow2.f32 %v972_v14  ;;  %v974_v18 = vmul.f32 1.442695, %v959_v12 }
 0x26d   : > { %v970_v21 = vmul.f32 1.442695, %v957_v17 }
 0x26e   : > { %v934_v22 = vpop.xlane.xlu0 %933 }
 0x26f   : > { %1822 = vpow2.f32 %v970_v21  ;;  %v960_v23 = vsub.f32 %v2130_v36, %v934_v22 }
 0x270   : > { %v937_v53 = vpop.xlane.xlu1 %936  ;;  %1824 = vpow2.f32 %v974_v18 }
 0x271   : > { %v976_v48 = vmul.f32 1.442695, %v960_v23  ;;  %v961_v56 = vsub.f32 %v2134_v46, %v937_v53 }
 0x272   : > { %v940_v24 = vpop.xlane.xlu0 %939 }
 0x273   : > { %1826 = vpow2.f32 %v976_v48  ;;  %v978_v25 = vmul.f32 1.442695, %v961_v56  ;;  %v962_v60 = vsub.f32 %v2136_v49, %v940_v24 }
 0x274   : > { %v943_v31 = vpop.xlane.xlu1 %942 }
 0x275   : > { %v2164_v20 = vpop.eup %1818  ;;  %1828 = vpow2.f32 %v978_v25  ;;  %v980_v63 = vmul.f32 1.442695, %v962_v60  ;;  %v963_v50 = vsub.f32 %v2142_v13, %v943_v31 }
 0x276   : > { %v946_v51 = vpop.xlane.xlu0 %945  ;;  %v992_v36 = vsel %vm919_vm6, %v2164_v20, 0.0  ;;  %v2169_v54 = vpop.eup %1820 }
 0x277   : > { %1830 = vpow2.f32 %v980_v63  ;;  %v982_v46 = vmul.f32 1.442695, %v963_v50  ;;  %v964_v55 = vsub.f32 %v915_v26, %v946_v51  ;;  %993 = vadd.xlane.f32.xlu0 %v992_v36  ;;  %v998_v13 = vsel %vm919_vm6, %v2169_v54, 0.0 }
 0x278   : > { %v949_v57 = vpop.xlane.xlu1 %948 }
 0x279   : > { %v2171_v11 = vpop.eup %1822  ;;  %1832 = vpow2.f32 %v982_v46  ;;  %v984_v49 = vmul.f32 1.442695, %v964_v55  ;;  %v965_v14 = vsub.f32 %v916_v34, %v949_v57 }
 0x27a   : > { %v952_v0 = vpop.xlane.xlu0 %951  ;;  %v995_v15 = vsel %vm919_vm6, %v2171_v11, 0.0  ;;  %v2177_v12 = vpop.eup %1824 }
 0x27b   : > { %1834 = vpow2.f32 %v984_v49  ;;  %v986_v16 = vmul.f32 1.442695, %v965_v14  ;;  %v966_v17 = vsub.f32 %v917_v35, %v952_v0  ;;  %999 = vadd.xlane.f32.xlu0 %v998_v13  ;;  %996 = vadd.xlane.f32.xlu1 %v995_v15  ;;  %v1001_v23 = vsel %vm919_vm6, %v2177_v12, 0.0 }
 0x27c   : > { %v955_v26 = vpop.xlane.xlu1 %954 }
 0x27d   : > { %v2179_v18 = vpop.eup %1826  ;;  %1836 = vpow2.f32 %v986_v16  ;;  %v988_v21 = vmul.f32 1.442695, %v966_v17  ;;  %v967_v34 = vsub.f32 %v2152_v41, %v955_v26 }
 0x27e   : > { %v1004_v22 = vsel %vm919_vm6, %v2179_v18, 0.0 }
 0x27f   : > { %v2186_v53 = vpop.eup %1828  ;;  %1838 = vpow2.f32 %v988_v21  ;;  %v990_v48 = vmul.f32 1.442695, %v967_v34  ;;  %1005 = vadd.xlane.f32.xlu0 %v1004_v22  ;;  %1002 = vadd.xlane.f32.xlu1 %v1001_v23 }
 0x280   : > { %v1007_v41 = vsel %vm919_vm6, %v2186_v53, 0.0 }
 0x281   : > { %v2188_v35 = vpop.eup %1830  ;;  %1840 = vpow2.f32 %v990_v48 }
 0x282   : > { %v1010_v56 = vsel %vm919_vm6, %v2188_v35, 0.0 }
 0x283   : > { %v2194_v24 = vpop.eup %1832  ;;  %1011 = vadd.xlane.f32.xlu0 %v1010_v56  ;;  %1008 = vadd.xlane.f32.xlu1 %v1007_v41 }
 0x284   : > { %v1013_v31 = vsel %vm919_vm6, %v2194_v24, 0.0 }
 0x285   : > { %v2196_v25 = vpop.eup %1834 }
 0x286   : > { %v1016_v60 = vsel %vm919_vm6, %v2196_v25, 0.0 }
 0x287   : > { %v2202_v63 = vpop.eup %1836  ;;  %1017 = vadd.xlane.f32.xlu0 %v1016_v60  ;;  %1014 = vadd.xlane.f32.xlu1 %v1013_v31 }
 0x288   : > { %v1019_v36 = vsel %vm919_vm6, %v2202_v63, 0.0 }
 0x289   : > { %v2204_v50 = vpop.eup %1838 }
 0x28a   : > { %v1022_v51 = vsel %vm919_vm6, %v2204_v50, 0.0 }
 0x28b   : > { %v2210_v46 = vpop.eup %1840  ;;  %1023 = vadd.xlane.f32.xlu0 %v1022_v51  ;;  %1020 = vadd.xlane.f32.xlu1 %v1019_v36 }
 0x28c   : > { %v1025_v55 = vsel %vm919_vm6, %v2210_v46, 0.0 }
 0x28f   : > { %1026 = vadd.xlane.f32.xlu1 %v1025_v55 }
 0x304   : > { %v994_v57 = vpop.xlane.xlu0 %993 }
 0x305   : > { %1842 = vrcp.f32 %v994_v57 }
 0x308   : > { %v1000_v49 = vpop.xlane.xlu0 %999  ;;  %v997_v14 = vpop.xlane.xlu1 %996 }
 0x309   : > { %1844 = vrcp.f32 %v1000_v49 }
 0x30a   : > { %1846 = vrcp.f32 %v997_v14 }
 0x30c   : > { %v1006_v0 = vpop.xlane.xlu0 %1005  ;;  %v1003_v13 = vpop.xlane.xlu1 %1002 }
 0x30d   : > { %1848 = vrcp.f32 %v1006_v0 }
 0x30e   : > { %1850 = vrcp.f32 %v1003_v13 }
 0x30f   : > { %v1843_v15 = vpop.eup %1842 }
 0x310   : > { %v1012_v16 = vpop.xlane.xlu0 %1011  ;;  %v1009_v17 = vpop.xlane.xlu1 %1008  ;;  %v1040_v21 = vmul.f32 %v1843_v15, %v2164_v20 }
 0x311   : > { %1852 = vrcp.f32 %v1012_v16 }
 0x312   : > { %1854 = vrcp.f32 %v1009_v17  ;;  %v1052_v41 = vadd.f32 %v2095_v47, %v1040_v21 }
 0x313   : > { %v1845_v26 = vpop.eup %1844 }
 0x314   : > { %v1847_v34 = vpop.eup %1846  ;;  %v1018_v22 = vpop.xlane.xlu0 %1017  ;;  %v1042_v60 = vmul.f32 %v1845_v26, %v2169_v54 }
 0x315   : > { %v1015_v23 = vpop.xlane.xlu1 %1014  ;;  %v1041_v48 = vmul.f32 %v1847_v34, %v2171_v11  ;;  %1856 = vrcp.f32 %v1018_v22 }
 0x316   : > { %1858 = vrcp.f32 %v1015_v23  ;;  %v1054_v11 = vadd.f32 %v2095_v47, %v1042_v60 }
 0x317   : > { %v1849_v56 = vpop.eup %1848  ;;  %v1053_v31 = vadd.f32 %v2098_v19, %v1041_v48 }
 0x318   : > { %v1851_v51 = vpop.eup %1850  ;;  %v1024_v36 = vpop.xlane.xlu0 %1023  ;;  %v1044_v14 = vmul.f32 %v1849_v56, %v2179_v18 }
 0x319   : > { %v1021_v55 = vpop.xlane.xlu1 %1020  ;;  %v1043_v57 = vmul.f32 %v1851_v51, %v2177_v12  ;;  %1860 = vrcp.f32 %v1024_v36  ;;  %v1064_v20 = vpack.c.bf16 %v1053_v31, %v1052_v41  ;;  %v1340_v36 = vld [vmem:[%s2348_s5] sm:$0xf] }
 0x31a   : > { %1862 = vrcp.f32 %v1021_v55  ;;  %v1056_v18 = vadd.f32 %v2095_v47, %v1044_v14 }
 0x31b   : > { %v1853_v49 = vpop.eup %1852  ;;  %v1055_v0 = vadd.f32 %v2098_v19, %v1043_v57  ;;  %1759 = vmatmul.mubr.msk.bf16.vlgmr.msra.gmra.mrb[12].mxu1 %vm919_vm6, %v1064_v20 }
 0x31c   : > { %v1855_v54 = vpop.eup %1854  ;;  %1769 = vmatpush3.bf16.msra.mxu1 %v2003_v52  ;;  %1770 = vmatprep.mubr.msk.bf16.mxu1 %vm1875_vm2, %v1874_v10  ;;  %v1046_v17 = vmul.f32 %v1853_v49, %v2188_v35 }
 0x31d   : > { %v1027_v13 = vpop.xlane.xlu1 %1026  ;;  %v1045_v12 = vmul.f32 %v1855_v54, %v2186_v53  ;;  %v1065_v15 = vpack.c.bf16 %v1055_v0, %v1054_v11  ;;  %1780 = vmatprep.subr.bf16.mxu1 %v1874_v10 }
 0x31e   : > { %1864 = vrcp.f32 %v1027_v13  ;;  %v1058_v22 = vadd.f32 %v2095_v47, %v1046_v17 }
 0x31f   : > { %v1857_v16 = vpop.eup %1856  ;;  %v1057_v26 = vadd.f32 %v2098_v19, %v1045_v12  ;;  %1765 = vmatmul.mubr.msk.bf16.vlgmr.msra.gmra.mrb[24].mxu0 %vm919_vm6, %v1065_v15 }
 0x320   : > { %v1859_v21 = vpop.eup %1858  ;;  %1775 = vmatpush3.bf16.msra.mxu0 %v2025_v3  ;;  %1776 = vmatprep.mubr.msk.bf16.mxu0 %vm1875_vm2, %v1874_v10  ;;  %v1048_v35 = vmul.f32 %v1857_v16, %v2196_v25 }
 0x321   : > { %v1047_v52 = vmul.f32 %v1859_v21, %v2194_v24  ;;  %v1066_v53 = vpack.c.bf16 %v1057_v26, %v1056_v18  ;;  %1786 = vmatprep.subr.bf16.mxu0 %v1874_v10 }
 0x322   : > { %v1060_v60 = vadd.f32 %v2095_v47, %v1048_v35 }
 0x323   : > { %v1861_v34 = vpop.eup %1860  ;;  %v1059_v23 = vadd.f32 %v2098_v19, %v1047_v52  ;;  %1771 = vmatmul.mubr.msk.bf16.vlgmr.msra.gmra.mrb[16].mxu1 %vm919_vm6, %v1066_v53 }
 0x324   : > { %v1863_v48 = vpop.eup %1862  ;;  %1781 = vmatpush3.bf16.msra.mxu1 %v2035_v6  ;;  %1782 = vmatprep.mubr.msk.bf16.mxu1 %vm1875_vm2, %v1874_v10  ;;  %v1050_v56 = vmul.f32 %v1861_v34, %v2204_v50 }
 0x325   : > { %v1049_v3 = vmul.f32 %v1863_v48, %v2202_v63  ;;  %v1067_v24 = vpack.c.bf16 %v1059_v23, %v1058_v22  ;;  %1807 = vmatprep.subr.msk.bf16.mxu1 %vm503_vm0, %v1340_v36 }
 0x326   : > { %v1062_v63 = vadd.f32 %v2095_v47, %v1050_v56 }
 0x327   : > { %v1061_v25 = vadd.f32 %v2098_v19, %v1049_v3  ;;  %1777 = vmatmul.mubr.msk.bf16.vlgmr.msra.gmra.mrb[28].mxu0 %vm919_vm6, %v1067_v24 }
 0x328   : > { %v1865_v41 = vpop.eup %1864  ;;  %1787 = vmatpush3.bf16.msra.mxu0 %v2047_v9  ;;  %1788 = vmatprep.mubr.msk.bf16.mxu0 %vm1875_vm2, %v1874_v10  ;;  %v1367_v9 = vsel %vm503_vm0, %v1340_v36, 0 }
 0x329   : > { %v1051_v31 = vmul.f32 %v1865_v41, %v2210_v46  ;;  %v1068_v6 = vpack.c.bf16 %v1061_v25, %v1060_v60  ;;  %v2272_v41 = vld [vmem:[%s2349_s6] ss:$0 sm:$0xff] }
 0x32b   : > { %v1063_v51 = vadd.f32 %v2098_v19, %v1051_v31  ;;  %1783 = vmatmul.mubr.msk.bf16.vlgmr.msra.gmra.mrb[20].mxu1 %vm919_vm6, %v1068_v6 }
 0x32c   : > { %1793 = vmatpush3.bf16.msra.mxu1 %v1367_v9 }
 0x32d   : > { %v1069_v50 = vpack.c.bf16 %v1063_v51, %v1062_v63 }
 0x32f   : > { %1789 = vmatmul.mubr.msk.bf16.vlgmr.msra.gmra.mrb[32].mxu0 %vm919_vm6, %v1069_v50 }
 0x3ee   : > { %v1107_v10 = vpop.f32.mrb[12].mxu1 }
 0x3ef   : > { %v1760_v46 = vpop.f32.mrb[13].mxu1 }
 0x3f0   : > { %v1110_v55 = vpop.f32.mrb[14].mxu1 }
 0x3f1   : > { %v1334_v47 = vpack.c.bf16 %v1110_v55, %v1107_v10  ;;  %v1761_v57 = vpop.f32.mrb[15].mxu1 }
 0x3f2   : > { %v1151_v19 = vpop.f32.mrb[24].mxu0 }
 0x3f3   : > { %v1766_v20 = vpop.f32.mrb[25].mxu0  ;;  %1794 = vmatprep.mubr.msk.bf16.mxu1 %vm484_vm1, %v1334_v47 }
 0x3f4   : > { %v1154_v49 = vpop.f32.mrb[26].mxu0 }
 0x3f5   : > { %v1335_v11 = vpack.c.bf16 %v1154_v49, %v1151_v19  ;;  %v1767_v14 = vpop.f32.mrb[27].mxu0 }
 0x3f6   : > { %v1195_v0 = vpop.f32.mrb[16].mxu1 }
 0x3f7   : > { %v1772_v54 = vpop.f32.mrb[17].mxu1  ;;  %1795 = vmatmul.mubr.msk.bf16.vlgmr.msra.gmra.mrb[24].mxu1 %vm484_vm1, %v1335_v11 }
 0x3f8   : > { %v1198_v13 = vpop.f32.mrb[18].mxu1 }
 0x3f9   : > { %v1336_v12 = vpack.c.bf16 %v1198_v13, %v1195_v0  ;;  %v1773_v15 = vpop.f32.mrb[19].mxu1 }
 0x3fa   : > { %v1239_v16 = vpop.f32.mrb[28].mxu0 }
 0x3fb   : > { %v1778_v18 = vpop.f32.mrb[29].mxu0  ;;  %1798 = vmatprep.mubr.msk.bf16.mxu1 %vm484_vm1, %v1336_v12 }
 0x3fc   : > { %v1242_v17 = vpop.f32.mrb[30].mxu0 }
 0x3fd   : > { %v1337_v26 = vpack.c.bf16 %v1242_v17, %v1239_v16  ;;  %v1779_v21 = vpop.f32.mrb[31].mxu0 }
 0x3fe   : > { %v1283_v52 = vpop.f32.mrb[20].mxu1 }
 0x3ff   : > { %v1784_v53 = vpop.f32.mrb[21].mxu1  ;;  %1799 = vmatmul.mubr.msk.bf16.gmra.mrb[28].mxu1 %vm484_vm1, %v1337_v26 }
 0x400   : > { %v1286_v34 = vpop.f32.mrb[22].mxu1 }
 0x401   : > { %v1338_v22 = vpack.c.bf16 %v1286_v34, %v1283_v52  ;;  %v1785_v35 = vpop.f32.mrb[23].mxu1 }
 0x402   : > { %v1327_v23 = vpop.f32.mrb[32].mxu0 }
 0x403   : > { %v1790_v48 = vpop.f32.mrb[33].mxu0  ;;  %1802 = vmatprep.mubr.msk.bf16.mxu1 %vm484_vm1, %v1338_v22 }
 0x404   : > { %v1330_v3 = vpop.f32.mrb[34].mxu0 }
 0x405   : > { %v1339_v24 = vpack.c.bf16 %v1330_v3, %v1327_v23  ;;  %v1791_v56 = vpop.f32.mrb[35].mxu0 }
 0x407   : > { %1803 = vmatmul.mubr.msk.bf16.gmra.mrb[32].mxu1 %vm484_vm1, %v1339_v24 }
 0x4ca   : > { %v1796_v60 = vpop.f32.mrb[24].mxu1 }
 0x4cb   : > { %v1412_v25 = vadd.f32 %v1796_v60, %v2272_v41  ;;  %v1403_v31 = vpop.f32.mrb[25].mxu1 }
 0x4cc   : > { %v1404_v6 = vadd.f32 %v2272_v41, %v1403_v31  ;;  %v1797_v63 = vpop.f32.mrb[26].mxu1 }
 0x4cd   : > { %v1452_v51 = vadd.f32 %v1412_v25, %v460_v39  ;;  %v1415_v50 = vadd.f32 %v1797_v63, %v2272_v41  ;;  %v1406_v36 = vpop.f32.mrb[27].mxu1 }
 0x4ce   : > { %v1450_v9 = vadd.f32 %v1404_v6, %v458_v37  ;;  %v1407_v10 = vadd.f32 %v2272_v41, %v1406_v36 }
 0x4cf   : > { %vm1464_vm0 = vcmp.ge.f32.partialorder %v1452_v51, 0.0  ;;  %v1476_v46 = vmul.f32 0.01, %v1452_v51  ;;  %v1453_v29 = vadd.f32 %v1415_v50, %v461_v40 }
 0x4d0   : > { %vm1462_vm2 = vcmp.ge.f32.partialorder %v1450_v9, 0.0  ;;  %v1474_v39 = vmul.f32 0.01, %v1450_v9  ;;  %v1451_v27 = vadd.f32 %v1407_v10, %v459_v38 }
 0x4d1   : > { %v1488_v37 = vsel %vm1464_vm0, %v1452_v51, %v1476_v46  ;;  %vm1465_vm5 = vcmp.ge.f32.partialorder %v1453_v29, 0.0  ;;  %v1477_v55 = vmul.f32 0.01, %v1453_v29 }
 0x4d2   : > { %1500 = vst.msk [vmem:[%s2286_s26 + $0x10] sm:$0xff] %vm484_vm1, %v1488_v37  ;;  %v1486_v47 = vsel %vm1462_vm2, %v1450_v9, %v1474_v39  ;;  %vm1463_vm6 = vcmp.ge.f32.partialorder %v1451_v27, 0.0  ;;  %v1475_v57 = vmul.f32 0.01, %v1451_v27  ;;  %v1800_v19 = vpop.f32.mrb[28].mxu1 }
 0x4d3   : > { %1498 = vst.msk [vmem:[%s2286_s26] sm:$0xff] %vm484_vm1, %v1486_v47  ;;  %v1489_v30 = vsel %vm1465_vm5, %v1453_v29, %v1477_v55  ;;  %v1428_v40 = vadd.f32 %v1800_v19, %v2272_v41  ;;  %v1419_v20 = vpop.f32.mrb[29].mxu1 }
 0x4d4   : > { %1501 = vst.msk [vmem:[%s2286_s26 + $0x18] sm:$0xff] %vm484_vm1, %v1489_v30  ;;  %v1487_v28 = vsel %vm1463_vm6, %v1451_v27, %v1475_v57  ;;  %v1420_v38 = vadd.f32 %v2272_v41, %v1419_v20  ;;  %v1801_v49 = vpop.f32.mrb[30].mxu1 }
 0x4d5   : > { %1499 = vst.msk [vmem:[%s2286_s26 + $0x8] sm:$0xff] %vm484_vm1, %v1487_v28  ;;  %v1456_v11 = vadd.f32 %v1428_v40, %v464_v58  ;;  %v1431_v14 = vadd.f32 %v1801_v49, %v2272_v41  ;;  %v1422_v0 = vpop.f32.mrb[31].mxu1 }
 0x4d6   : > { %v1454_v54 = vadd.f32 %v1420_v38, %v462_v42  ;;  %v1423_v13 = vadd.f32 %v2272_v41, %v1422_v0 }
 0x4d7   : > { %vm1468_vm7 = vcmp.ge.f32.partialorder %v1456_v11, 0.0  ;;  %v1480_v12 = vmul.f32 0.01, %v1456_v11  ;;  %v1457_v15 = vadd.f32 %v1431_v14, %v465_v59 }
 0x4d8   : > { %vm1466_vm8 = vcmp.ge.f32.partialorder %v1454_v54, 0.0  ;;  %v1478_v16 = vmul.f32 0.01, %v1454_v54  ;;  %v1455_v44 = vadd.f32 %v1423_v13, %v463_v43 }
 0x4d9   : > { %v1492_v58 = vsel %vm1468_vm7, %v1456_v11, %v1480_v12  ;;  %vm1469_vm9 = vcmp.ge.f32.partialorder %v1457_v15, 0.0  ;;  %v1481_v18 = vmul.f32 0.01, %v1457_v15 }
 0x4da   : > { %1504 = vst.msk [vmem:[%s2286_s26 + $0x30] sm:$0xff] %vm484_vm1, %v1492_v58  ;;  %v1490_v32 = vsel %vm1466_vm8, %v1454_v54, %v1478_v16  ;;  %vm1467_vm10 = vcmp.ge.f32.partialorder %v1455_v44, 0.0  ;;  %v1479_v42 = vmul.f32 0.01, %v1455_v44  ;;  %v1804_v17 = vpop.f32.mrb[32].mxu1 }
 0x4db   : > { %1502 = vst.msk [vmem:[%s2286_s26 + $0x20] sm:$0xff] %vm484_vm1, %v1490_v32  ;;  %v1493_v45 = vsel %vm1469_vm9, %v1457_v15, %v1481_v18  ;;  %v1444_v59 = vadd.f32 %v1804_v17, %v2272_v41  ;;  %v1435_v26 = vpop.f32.mrb[33].mxu1 }
 0x4dc   : > { %1505 = vst.msk [vmem:[%s2286_s26 + $0x38] sm:$0xff] %vm484_vm1, %v1493_v45  ;;  %v1491_v33 = vsel %vm1467_vm10, %v1455_v44, %v1479_v42  ;;  %v1436_v43 = vadd.f32 %v2272_v41, %v1435_v26  ;;  %v1805_v21 = vpop.f32.mrb[34].mxu1 }
 0x4dd   : > { %1503 = vst.msk [vmem:[%s2286_s26 + $0x28] sm:$0xff] %vm484_vm1, %v1491_v33  ;;  %v1460_v52 = vadd.f32 %v1444_v59, %v468_v7  ;;  %v1447_v53 = vadd.f32 %v1805_v21, %v2272_v41  ;;  %v1438_v34 = vpop.f32.mrb[35].mxu1 }
 0x4de   : > { %v1458_v22 = vadd.f32 %v1436_v43, %v466_v1  ;;  %v1439_v35 = vadd.f32 %v2272_v41, %v1438_v34 }
 0x4df   : > { %vm1472_vm11 = vcmp.ge.f32.partialorder %v1460_v52, 0.0  ;;  %v1484_v23 = vmul.f32 0.01, %v1460_v52  ;;  %v1461_v48 = vadd.f32 %v1447_v53, %v469_v8 }
 0x4e0   : > { %vm1470_vm12 = vcmp.ge.f32.partialorder %v1458_v22, 0.0  ;;  %v1482_v3 = vmul.f32 0.01, %v1458_v22  ;;  %v1459_v4 = vadd.f32 %v1439_v35, %v467_v2 }
 0x4e1   : > { %v1496_v7 = vsel %vm1472_vm11, %v1460_v52, %v1484_v23  ;;  %vm1473_vm13 = vcmp.ge.f32.partialorder %v1461_v48, 0.0  ;;  %v1485_v24 = vmul.f32 0.01, %v1461_v48 }
 0x4e2   : > { %1508 = vst.msk [vmem:[%s2286_s26 + $0x50] sm:$0xff] %vm484_vm1, %v1496_v7  ;;  %v1494_v61 = vsel %vm1470_vm12, %v1458_v22, %v1482_v3  ;;  %vm1471_vm14 = vcmp.ge.f32.partialorder %v1459_v4, 0.0  ;;  %v1483_v1 = vmul.f32 0.01, %v1459_v4 }
 0x4e3   : > { %1506 = vst.msk [vmem:[%s2286_s26 + $0x40] sm:$0xff] %vm484_vm1, %v1494_v61  ;;  %v1497_v56 = vsel %vm1473_vm13, %v1461_v48, %v1485_v24 }
 0x4e4   : > { %1509 = vst.msk [vmem:[%s2286_s26 + $0x58] sm:$0xff] %vm484_vm1, %v1497_v56  ;;  %v1495_v5 = vsel %vm1471_vm14, %v1459_v4, %v1483_v1 }
 0x4e5   : > { %1507 = vst.msk [vmem:[%s2286_s26 + $0x48] sm:$0xff] %vm484_vm1, %v1495_v5 }
 0x4e6 PF: > { %s17_s24 = sadd.s32 1, %s1872_s24  }
 0x4e7   : > { %p14_p4 = scmp.ge.s32.totalorder %s17_s24, 5  }
 0x4e9   :  { %16 = sbr.rel (!%p14_p4) target bundleno = 1 (0x1), region = 84 }

</bundles_post_ra>
